<compile_context>
chip_gen: v6e
topology: v6e:2x2x1
jax: 0.10.0
libtpu: 0.0.40
codegen_flags: <defaults>
</compile_context>

<pallas_src>
import functools

import jax
import jax.numpy as jnp
from jax.experimental import pallas as pl
from jax.experimental.pallas import tpu as pltpu


def mhla_kernel(heads, dh, x_ref, g_in_ref, w_qkv_ref, w_ffn_ref,
                b_ffn_ref, g_out_ref, mask_ref, out_ref):
    """Block of BB batch elements. x_ref: (BB, C, P), channels on sublanes."""
    BB, C, P = x_ref.shape
    hid = heads * dh
    sqrt_c = float(C) ** 0.5
    eps2 = 1e-24  # (1e-12)^2 -> matches F.normalize's max(||x||, 1e-12)

    # Hoisted, loop-invariant reads (weights stay VMEM-resident, bf16).
    g_in = g_in_ref[...] * sqrt_c           # (C, 1) f32
    g_out = g_out_ref[...] * sqrt_c         # (C, 1) f32
    b_ffn = b_ffn_ref[...]                  # (C, 1) f32
    w_qkv = w_qkv_ref[...]                  # (3*hid, C) bf16
    w_ffn = w_ffn_ref[...]                  # (C, hid)  bf16
    mask_scale = mask_ref[...]              # (hid, hid) f32, blockdiag * scale

    for bi in range(BB):
        x = x_ref[bi].astype(jnp.float32)                            # (C, P)

        # ---------------- RMSNorm over channels (sublane reduction) ----------------
        ss = jnp.sum(x * x, axis=0, keepdims=True)                   # (1, P)
        inv = jax.lax.rsqrt(jnp.maximum(ss, eps2))
        xn = x * inv * g_in                                          # (C, P) f32

        # -------- fused qkv 1x1 conv: one bf16 matmul for q, k, v, all heads --------
        qkv = jnp.dot(w_qkv, xn.astype(jnp.bfloat16),
                      preferred_element_type=jnp.float32)            # (3*hid, P) f32

        q = qkv[0:hid]                                               # (hid, P)
        k = qkv[hid:2 * hid]                                         # (hid, P)
        v = qkv[2 * hid:3 * hid]                                     # (hid, P)

        # q softmax over channel_head, per head (layout-preserving 3D reshape:
        # sublane split 128 -> 4x32, reductions over the per-head sublane group).
        q3 = q.reshape(heads, dh, P)
        qe = jnp.exp(q3 - jnp.max(q3, axis=1, keepdims=True))        # (heads, dh, P)
        qrec = pl.reciprocal(jnp.sum(qe, axis=1, keepdims=True),
                             approx=True)                            # (heads, 1, P)

        # k softmax over pixels (lane reduction); the row normalization is NOT
        # applied to the full (hid, P) tile -- it is folded into the second
        # matmul's contraction operand below.
        ke = jnp.exp(k - jnp.max(k, axis=1, keepdims=True))          # (hid, P)
        krec = pl.reciprocal(jnp.sum(ke, axis=1, keepdims=True),
                             approx=True)                            # (hid, 1)

        # qs carries both the q-softmax normalization and the k row reciprocal
        # (krec indexes the contraction dim of the out matmul), fused into the
        # same elementwise pass.
        qs = ((qe * qrec) * krec.reshape(heads, dh, 1)).reshape(hid, P)

        # ----- fused all-heads attention: one (hid,P)x(P,hid) bf16 matmul -----
        # attn_raw[e, d] = sum_p v[e, p] * ke[d, p]
        attn = jax.lax.dot_general(
            v.astype(jnp.bfloat16), ke.astype(jnp.bfloat16),
            (((1,), (1,)), ((), ())),
            preferred_element_type=jnp.float32)                      # (hid, hid)
        attn = attn * mask_scale                                     # blockdiag + q scale

        # out_all[e, p] = sum_d attn[e, d] * qs[d, p]
        out_h = jnp.dot(attn.astype(jnp.bfloat16), qs.astype(jnp.bfloat16),
                        preferred_element_type=jnp.float32)          # (hid, P)

        # ---------------- ffn: 1x1 conv (+bias) then RMSNorm ----------------
        y = jnp.dot(w_ffn, out_h.astype(jnp.bfloat16),
                    preferred_element_type=jnp.float32) + b_ffn      # (C, P)
        ss2 = jnp.sum(y * y, axis=0, keepdims=True)
        inv2 = jax.lax.rsqrt(jnp.maximum(ss2, eps2))
        out_ref[bi] = (y * inv2 * g_out).astype(out_ref.dtype)


def _pick_block_b(batch, max_bb=8):
    """Largest divisor of `batch` (<= max_bb) that keeps >= 2 grid steps,
    so v7x's two TensorCores both get work on the 'parallel' batch axis."""
    best = 1
    for bb in range(1, min(max_bb, batch) + 1):
        if batch % bb == 0 and (batch // bb >= 2 or batch == 1):
            best = bb
    return best


def mhla_forward(x_nchw, params, heads, channel_head, block_b=None):
    """x_nchw: (B, C, H, W). Returns (B, C, H, W) in x's dtype."""
    B, C, H, W = x_nchw.shape
    P = H * W
    hid = heads * channel_head
    if block_b is None:
        block_b = _pick_block_b(B)
    assert B % block_b == 0

    # Free reshape of NCHW; no dtype cast in the wrapper (bf16 inputs stay bf16
    # in HBM and are upcast inside the kernel).
    x = x_nchw.reshape(B, C, P)
    # TODO(synk): for UNet stages where H*W is not a multiple of 128, pack
    # batch along the lane axis / pad-and-mask the k-softmax to keep stores
    # lane-dense; P = 256 here is already a multiple of 128.

    def col(v):  # (C,) -> (C, 1) column, broadcasts over the lane/pixel axis
        return jnp.asarray(v, jnp.float32).reshape(-1, 1)

    # Weights shipped as bf16 so every matmul is a single-pass MXU op.
    w_qkv = jnp.asarray(params["w_qkv"])[:, :, 0, 0].astype(jnp.bfloat16)  # (3*hid, C)
    w_ffn = jnp.asarray(params["w_ffn"])[:, :, 0, 0].astype(jnp.bfloat16)  # (C, hid)

    # Block-diagonal head mask pre-multiplied by the q scale (constant).
    scale = float(channel_head) ** -0.5
    head_ids = jnp.arange(hid) // channel_head
    mask_scale = (head_ids[:, None] == head_ids[None, :]).astype(jnp.float32) * scale

    kernel = functools.partial(mhla_kernel, heads, channel_head)
    out = pl.pallas_call(
        kernel,
        out_shape=jax.ShapeDtypeStruct((B, C, P), x_nchw.dtype),
        grid=(B // block_b,),
        in_specs=[
            pl.BlockSpec((block_b, C, P), lambda b: (b, 0, 0)),      # x (batch block)
            pl.BlockSpec((C, 1), lambda b: (0, 0)),                  # g_norm
            pl.BlockSpec((3 * hid, C), lambda b: (0, 0)),            # qkv weight (bf16)
            pl.BlockSpec((C, hid), lambda b: (0, 0)),                # ffn conv weight (bf16)
            pl.BlockSpec((C, 1), lambda b: (0, 0)),                  # ffn conv bias
            pl.BlockSpec((C, 1), lambda b: (0, 0)),                  # ffn RMSNorm g
            pl.BlockSpec((hid, hid), lambda b: (0, 0)),              # blockdiag mask * scale
        ],
        out_specs=pl.BlockSpec((block_b, C, P), lambda b: (b, 0, 0)),
        compiler_params=pltpu.CompilerParams(
            dimension_semantics=("parallel",)),                      # batch across TCs
    )(x, col(params["g_norm"]), w_qkv, w_ffn, col(params["b_ffn"]),
      col(params["g_ffn"]), mask_scale)

    return out.reshape(B, C, H, W)


def mhla_reference(x, p, heads, channel_head, eps=1e-12):
    """Pure-JAX reference mirroring the PyTorch module forward."""
    B, C, H, W = x.shape
    P = H * W
    hid = heads * channel_head
    scale = channel_head ** -0.5
    sqrt_c = float(C) ** 0.5

    def rmsnorm(t, g):  # F.normalize(t, dim=1) * g * sqrt(C)
        n = jnp.sqrt(jnp.sum(t * t, axis=1, keepdims=True))
        return t / jnp.maximum(n, eps) * g[None, :, None, None] * sqrt_c

    xn = rmsnorm(x, p["g_norm"])
    qkv = jnp.einsum("oc,bchw->bohw", p["w_qkv"][:, :, 0, 0], xn)
    q, k, v = jnp.split(qkv, 3, axis=1)

    def to_heads(t):  # 'b (h c) x y -> b h (x y) c'
        return t.reshape(B, heads, channel_head, P).transpose(0, 1, 3, 2)

    q, k, v = map(to_heads, (q, k, v))
    q = jax.nn.softmax(q, axis=-1)
    k = jax.nn.softmax(k, axis=-2)
    q = q * scale
    attn = jnp.einsum("bhpd,bhpe->bhde", k, v)
    out = jnp.einsum("bhpd,bhde->bhpe", q, attn)
    out = out.transpose(0, 1, 3, 2).reshape(B, hid, H, W)      # 'b h (x y) c -> b (h c) x y'
    out = (jnp.einsum("oc,bchw->bohw", p["w_ffn"][:, :, 0, 0], out)
           + p["b_ffn"][None, :, None, None])
    out = rmsnorm(out, p["g_ffn"])
    return out


if __name__ == "__main__":
    B, C, H, W = 2, 4, 16, 16
    heads, channel_head, num_mem_kv = 4, 32, 4
    hid = heads * channel_head

    key = jax.random.PRNGKey(0)
    keys = jax.random.split(key, 8)

    def nrm(k, shape, s=0.2):
        return (s * jax.random.normal(k, shape)).astype(jnp.float32)

    params = {
        "g_norm": 1.0 + nrm(keys[0], (C,)),                 # self.norm RMSNorm gain
        "w_qkv": nrm(keys[1], (3 * hid, C, 1, 1)),          # qkv 1x1 conv, no bias
        "w_ffn": nrm(keys[2], (C, hid, 1, 1)),              # ffn 1x1 conv
        "b_ffn": nrm(keys[3], (C,)),
        "g_ffn": 1.0 + nrm(keys[4], (C,)),                  # ffn RMSNorm gain
        # mem_kv is a parameter of the module but is never used in forward().
        "mem_kv": nrm(keys[5], (2, heads, num_mem_kv, channel_head)),
    }
    x = jax.random.normal(keys[6], (B, C, H, W), dtype=jnp.float32)

    # Kernel runs under default precision (bf16 MXU operands, f32 accumulation).
    out = mhla_forward(x, params, heads, channel_head)
    out = jax.block_until_ready(out)

    # Strict f32 reference for the correctness check.
    with jax.default_matmul_precision("highest"):
        ref = mhla_reference(x, params, heads, channel_head)

    assert out.shape == (B, C, H, W)
    err = float(jnp.max(jnp.abs(out - ref)))
    # bf16 operand matmuls (f32 accumulation): allow a bf16-level tolerance.
    assert err < 3e-2, f"max abs err {err}"
    print("KERNEL_OK")
</pallas_src>

<mosaic_0001>
module attributes {stable_mosaic.version = 11 : i64} {
  func.func @mhla_kernel(%arg0: i32, %arg1: memref<1x4x256xf32, #tpu.memory_space<vmem>>, %arg2: memref<4x1xf32, #tpu.memory_space<vmem>>, %arg3: memref<384x4xbf16, #tpu.memory_space<vmem>>, %arg4: memref<4x128xbf16, #tpu.memory_space<vmem>>, %arg5: memref<4x1xf32, #tpu.memory_space<vmem>>, %arg6: memref<4x1xf32, #tpu.memory_space<vmem>>, %arg7: memref<128x128xf32, #tpu.memory_space<vmem>>, %arg8: memref<1x4x256xf32, #tpu.memory_space<vmem>>) attributes {dimension_semantics = [#tpu.dimension_semantics<parallel>], iteration_bounds = array<i64: 2>, scalar_prefetch = 0 : i64, scratch_operands = 0 : i64, tpu.core_type = #tpu.core_type<tc>, window_params = [{transform_indices = @transform_0, window_bounds = array<i64: 1, 4, 256>}, {pipeline_mode = #tpu.pipeline_mode<synchronous>, transform_indices = @transform_1, window_bounds = array<i64: 4, 1>}, {pipeline_mode = #tpu.pipeline_mode<synchronous>, transform_indices = @transform_2, window_bounds = array<i64: 384, 4>}, {pipeline_mode = #tpu.pipeline_mode<synchronous>, transform_indices = @transform_3, window_bounds = array<i64: 4, 128>}, {pipeline_mode = #tpu.pipeline_mode<synchronous>, transform_indices = @transform_4, window_bounds = array<i64: 4, 1>}, {pipeline_mode = #tpu.pipeline_mode<synchronous>, transform_indices = @transform_5, window_bounds = array<i64: 4, 1>}, {pipeline_mode = #tpu.pipeline_mode<synchronous>, transform_indices = @transform_6, window_bounds = array<i64: 128, 128>}, {transform_indices = @transform_7, window_bounds = array<i64: 1, 4, 256>}]} {
    %c0 = arith.constant 0 : index
    %c0_0 = arith.constant 0 : index
    %0 = vector.load %arg2[%c0, %c0_0] : memref<4x1xf32, #tpu.memory_space<vmem>>, vector<4x1xf32>
    %cst = arith.constant 2.000000e+00 : f32
    %1 = vector.broadcast %cst : f32 to vector<4x1xf32>
    %2 = arith.mulf %0, %1 : vector<4x1xf32>
    %c0_1 = arith.constant 0 : index
    %c0_2 = arith.constant 0 : index
    %3 = vector.load %arg6[%c0_1, %c0_2] : memref<4x1xf32, #tpu.memory_space<vmem>>, vector<4x1xf32>
    %cst_3 = arith.constant 2.000000e+00 : f32
    %4 = vector.broadcast %cst_3 : f32 to vector<4x1xf32>
    %5 = arith.mulf %3, %4 : vector<4x1xf32>
    %c0_4 = arith.constant 0 : index
    %c0_5 = arith.constant 0 : index
    %6 = vector.load %arg5[%c0_4, %c0_5] : memref<4x1xf32, #tpu.memory_space<vmem>>, vector<4x1xf32>
    %c0_6 = arith.constant 0 : index
    %c0_7 = arith.constant 0 : index
    %7 = vector.load %arg3[%c0_6, %c0_7] : memref<384x4xbf16, #tpu.memory_space<vmem>>, vector<384x4xbf16>
    %c0_8 = arith.constant 0 : index
    %c0_9 = arith.constant 0 : index
    %8 = vector.load %arg4[%c0_8, %c0_9] : memref<4x128xbf16, #tpu.memory_space<vmem>>, vector<4x128xbf16>
    %c0_10 = arith.constant 0 : index
    %c0_11 = arith.constant 0 : index
    %9 = vector.load %arg7[%c0_10, %c0_11] : memref<128x128xf32, #tpu.memory_space<vmem>>, vector<128x128xf32>
    %c0_12 = arith.constant 0 : index
    %c0_13 = arith.constant 0 : index
    %c0_14 = arith.constant 0 : index
    %10 = vector.load %arg1[%c0_12, %c0_13, %c0_14] : memref<1x4x256xf32, #tpu.memory_space<vmem>>, vector<1x4x256xf32>
    %11 = vector.shape_cast %10 : vector<1x4x256xf32> to vector<4x256xf32>
    %12 = arith.mulf %11, %11 : vector<4x256xf32>
    %cst_15 = arith.constant dense<0.000000e+00> : vector<256xf32>
    %13 = vector.multi_reduction <add>, %12, %cst_15 [0] : vector<4x256xf32> to vector<256xf32>
    %14 = vector.shape_cast %13 : vector<256xf32> to vector<1x256xf32>
    %cst_16 = arith.constant 1.000000e-24 : f32
    %15 = vector.broadcast %cst_16 : f32 to vector<1x256xf32>
    %16 = arith.maximumf %14, %15 : vector<1x256xf32>
    %17 = math.rsqrt %16 : vector<1x256xf32>
    %18 = vector.broadcast %17 : vector<1x256xf32> to vector<4x256xf32>
    %19 = arith.mulf %11, %18 : vector<4x256xf32>
    %20 = vector.broadcast %2 : vector<4x1xf32> to vector<4x256xf32>
    %21 = arith.mulf %19, %20 : vector<4x256xf32>
    %22 = arith.truncf %21 : vector<4x256xf32> to vector<4x256xbf16>
    %cst_17 = arith.constant dense<0.000000e+00> : vector<384x256xf32>
    %23 = tpu.matmul %7, %22, %cst_17 {dimension_numbers = #tpu.dot_dimension_numbers<[1], [0], [0], [1], [0, 0, 1, 1], [], []>} : vector<384x4xbf16>, vector<4x256xbf16>, vector<384x256xf32> -> vector<384x256xf32>
    %24 = vector.extract_strided_slice %23 {offsets = [0, 0], sizes = [128, 256], strides = [1, 1]} : vector<384x256xf32> to vector<128x256xf32>
    %25 = vector.extract_strided_slice %23 {offsets = [128, 0], sizes = [128, 256], strides = [1, 1]} : vector<384x256xf32> to vector<128x256xf32>
    %26 = vector.extract_strided_slice %23 {offsets = [256, 0], sizes = [128, 256], strides = [1, 1]} : vector<384x256xf32> to vector<128x256xf32>
    %27 = vector.shape_cast %24 : vector<128x256xf32> to vector<4x32x256xf32>
    %cst_18 = arith.constant dense<0xFF800000> : vector<4x256xf32>
    %28 = vector.multi_reduction <maximumf>, %27, %cst_18 [1] : vector<4x32x256xf32> to vector<4x256xf32>
    %29 = vector.shape_cast %28 : vector<4x256xf32> to vector<4x1x256xf32>
    %30 = vector.broadcast %29 : vector<4x1x256xf32> to vector<4x32x256xf32>
    %31 = arith.subf %27, %30 : vector<4x32x256xf32>
    %32 = math.exp %31 : vector<4x32x256xf32>
    %cst_19 = arith.constant dense<0.000000e+00> : vector<4x256xf32>
    %33 = vector.multi_reduction <add>, %32, %cst_19 [1] : vector<4x32x256xf32> to vector<4x256xf32>
    %34 = vector.shape_cast %33 : vector<4x256xf32> to vector<4x1x256xf32>
    %35 = tpu.reciprocal %34 {approx = true} : vector<4x1x256xf32> -> vector<4x1x256xf32>
    %cst_20 = arith.constant dense<0xFF800000> : vector<128xf32>
    %36 = vector.multi_reduction <maximumf>, %25, %cst_20 [1] : vector<128x256xf32> to vector<128xf32>
    %37 = vector.shape_cast %36 : vector<128xf32> to vector<128x1xf32>
    %38 = vector.broadcast %37 : vector<128x1xf32> to vector<128x256xf32>
    %39 = arith.subf %25, %38 : vector<128x256xf32>
    %40 = math.exp %39 : vector<128x256xf32>
    %cst_21 = arith.constant dense<0.000000e+00> : vector<128xf32>
    %41 = vector.multi_reduction <add>, %40, %cst_21 [1] : vector<128x256xf32> to vector<128xf32>
    %42 = vector.shape_cast %41 : vector<128xf32> to vector<128x1xf32>
    %43 = tpu.reciprocal %42 {approx = true} : vector<128x1xf32> -> vector<128x1xf32>
    %44 = vector.broadcast %35 : vector<4x1x256xf32> to vector<4x32x256xf32>
    %45 = arith.mulf %32, %44 : vector<4x32x256xf32>
    %46 = vector.shape_cast %43 : vector<128x1xf32> to vector<4x32x1xf32>
    %47 = vector.broadcast %46 : vector<4x32x1xf32> to vector<4x32x256xf32>
    %48 = arith.mulf %45, %47 : vector<4x32x256xf32>
    %49 = vector.shape_cast %48 : vector<4x32x256xf32> to vector<128x256xf32>
    %50 = arith.truncf %26 : vector<128x256xf32> to vector<128x256xbf16>
    %51 = arith.truncf %40 : vector<128x256xf32> to vector<128x256xbf16>
    %cst_22 = arith.constant dense<0.000000e+00> : vector<128x128xf32>
    %52 = tpu.matmul %50, %51, %cst_22 {dimension_numbers = #tpu.dot_dimension_numbers<[1], [1], [0], [0], [0, 0, 1, 0], [], []>} : vector<128x256xbf16>, vector<128x256xbf16>, vector<128x128xf32> -> vector<128x128xf32>
    %53 = arith.mulf %52, %9 : vector<128x128xf32>
    %54 = arith.truncf %53 : vector<128x128xf32> to vector<128x128xbf16>
    %55 = arith.truncf %49 : vector<128x256xf32> to vector<128x256xbf16>
    %cst_23 = arith.constant dense<0.000000e+00> : vector<128x256xf32>
    %56 = tpu.matmul %54, %55, %cst_23 {dimension_numbers = #tpu.dot_dimension_numbers<[1], [0], [0], [1], [0, 0, 1, 1], [], []>} : vector<128x128xbf16>, vector<128x256xbf16>, vector<128x256xf32> -> vector<128x256xf32>
    %57 = arith.truncf %56 : vector<128x256xf32> to vector<128x256xbf16>
    %cst_24 = arith.constant dense<0.000000e+00> : vector<4x256xf32>
    %58 = tpu.matmul %8, %57, %cst_24 {dimension_numbers = #tpu.dot_dimension_numbers<[1], [0], [0], [1], [0, 0, 1, 1], [], []>} : vector<4x128xbf16>, vector<128x256xbf16>, vector<4x256xf32> -> vector<4x256xf32>
    %59 = vector.broadcast %6 : vector<4x1xf32> to vector<4x256xf32>
    %60 = arith.addf %58, %59 : vector<4x256xf32>
    %61 = arith.mulf %60, %60 : vector<4x256xf32>
    %cst_25 = arith.constant dense<0.000000e+00> : vector<256xf32>
    %62 = vector.multi_reduction <add>, %61, %cst_25 [0] : vector<4x256xf32> to vector<256xf32>
    %63 = vector.shape_cast %62 : vector<256xf32> to vector<1x256xf32>
    %cst_26 = arith.constant 1.000000e-24 : f32
    %64 = vector.broadcast %cst_26 : f32 to vector<1x256xf32>
    %65 = arith.maximumf %63, %64 : vector<1x256xf32>
    %66 = math.rsqrt %65 : vector<1x256xf32>
    %67 = vector.broadcast %66 : vector<1x256xf32> to vector<4x256xf32>
    %68 = arith.mulf %60, %67 : vector<4x256xf32>
    %69 = vector.broadcast %5 : vector<4x1xf32> to vector<4x256xf32>
    %70 = arith.mulf %68, %69 : vector<4x256xf32>
    %c0_27 = arith.constant 0 : index
    %c0_28 = arith.constant 0 : index
    %c0_29 = arith.constant 0 : index
    %71 = vector.load %arg8[%c0_27, %c0_28, %c0_29] : memref<1x4x256xf32, #tpu.memory_space<vmem>>, vector<1x4x256xf32>
    %72 = vector.shape_cast %71 : vector<1x4x256xf32> to vector<4x256xf32>
    %73 = vector.shape_cast %70 : vector<4x256xf32> to vector<1x4x256xf32>
    tpu.vector_store %arg8[%c0_27, %c0_28, %c0_29], %73 {strides = array<i32>} : memref<1x4x256xf32, #tpu.memory_space<vmem>>, vector<1x4x256xf32>,
    return
  }
  func.func @transform_0(%arg0: i32) -> (i32, i32, i32) {
    %c0_i32 = arith.constant 0 : i32
    %c0_i32_0 = arith.constant 0 : i32
    %c0_i32_1 = arith.constant 0 : i32
    return %arg0, %c0_i32, %c0_i32_0 : i32, i32, i32
  }
  func.func @transform_1(%arg0: i32) -> (i32, i32) {
    %c0_i32 = arith.constant 0 : i32
    %c0_i32_0 = arith.constant 0 : i32
    %c0_i32_1 = arith.constant 0 : i32
    return %c0_i32, %c0_i32_0 : i32, i32
  }
  func.func @transform_2(%arg0: i32) -> (i32, i32) {
    %c0_i32 = arith.constant 0 : i32
    %c0_i32_0 = arith.constant 0 : i32
    %c0_i32_1 = arith.constant 0 : i32
    return %c0_i32, %c0_i32_0 : i32, i32
  }
  func.func @transform_3(%arg0: i32) -> (i32, i32) {
    %c0_i32 = arith.constant 0 : i32
    %c0_i32_0 = arith.constant 0 : i32
    %c0_i32_1 = arith.constant 0 : i32
    return %c0_i32, %c0_i32_0 : i32, i32
  }
  func.func @transform_4(%arg0: i32) -> (i32, i32) {
    %c0_i32 = arith.constant 0 : i32
    %c0_i32_0 = arith.constant 0 : i32
    %c0_i32_1 = arith.constant 0 : i32
    return %c0_i32, %c0_i32_0 : i32, i32
  }
  func.func @transform_5(%arg0: i32) -> (i32, i32) {
    %c0_i32 = arith.constant 0 : i32
    %c0_i32_0 = arith.constant 0 : i32
    %c0_i32_1 = arith.constant 0 : i32
    return %c0_i32, %c0_i32_0 : i32, i32
  }
  func.func @transform_6(%arg0: i32) -> (i32, i32) {
    %c0_i32 = arith.constant 0 : i32
    %c0_i32_0 = arith.constant 0 : i32
    %c0_i32_1 = arith.constant 0 : i32
    return %c0_i32, %c0_i32_0 : i32, i32
  }
  func.func @transform_7(%arg0: i32) -> (i32, i32, i32) {
    %c0_i32 = arith.constant 0 : i32
    %c0_i32_0 = arith.constant 0 : i32
    %c0_i32_1 = arith.constant 0 : i32
    return %arg0, %c0_i32, %c0_i32_0 : i32, i32, i32
  }
}

</mosaic_0001>

<bundles_post_ra>
// kernel: tpu_custom_call.1
= control target key start
LH: loop header
LB: loop body
LE: loop exit
PB: predicated region body
PF: predicated region fallthrough
CT: control target
= control target key end

     0   :  { %12 = vsyncpa [#allocation3], 0  ;;  %s3004_s0 = inlined_call_operand.vmem [shape: f32[2,4,256], index: 0, kind: input, shape index: {}]   ;;  %s3005_s1 = inlined_call_operand.vmem [shape: f32[4,1], index: 1, kind: input, shape index: {}]   ;;  %s3006_s2 = inlined_call_operand.vmem [shape: bf16[384,4], index: 2, kind: input, shape index: {}]   ;;  %s3007_s3 = inlined_call_operand.vmem [shape: bf16[4,128], index: 3, kind: input, shape index: {}]   ;;  %s3008_s4 = inlined_call_operand.vmem [shape: f32[4,1], index: 4, kind: input, shape index: {}]   ;;  %s3009_s5 = inlined_call_operand.vmem [shape: f32[4,1], index: 5, kind: input, shape index: {}]   ;;  %s3010_s6 = inlined_call_operand.vmem [shape: f32[128,128], index: 6, kind: input, shape index: {}]   ;;  %s3011_s7 = inlined_call_operand.hbm [shape: f32[2,4,256], index: 7, kind: output, shape index: {}]  }
   0x1   :  { %14 = vsyncpa [#allocation3 + $0x1], 0  ;;  %s2259_s24 = smov 0   ;;  %s2261_s25 = smov 0  }
   0x2   :  { %s2263_s26 = smov 0   ;;  %s2265_s27 = smov 0  }
   0x3 LB: > { %s2280_s28 = sadd.s32 4294967295, %s2214_s27   ;;  %s1840_s29 = sadd.s32 4294967294, %s2214_s27   ;;  %s2214_s27 = sphi %s2265_s27, %s3057_s27   ;;  %s2210_s26 = sphi %s2263_s26, %s3056_s26   ;;  %s2206_s25 = sphi %s2261_s25, %s3055_s25   ;;  %s2202_s24 = sphi %s2259_s24, %s3054_s24  }
   0x4   : > { %s2284_s30 = sadd.s32 1, %s2214_s27   ;;  %s179_s8 = sadd.s32 1, %s2210_s26 }
   0x5   : > { %s176_s9 = ssub.s32 %s2214_s27, %s2284_s30  ;;  %p189_p0 = scmp.ne.s32.totalorder %s2210_s26, %s2206_s25 }
   0x6   : > { %p177_p1 = scmp.eq.s32.totalorder %s176_s9, 0  ;;  %p190_p2 = scmp.eq.s32.totalorder %s2280_s28, 1 }
   0x7   : > { %p195_p3 = scmp.ne.s32.totalorder %s2206_s25, %s2202_s24  ;;  %p196_p4 = scmp.eq.s32.totalorder %s1840_s29, 1 }
   0x8   : > { %s2295_s10 = scalar_select %p177_p1, %s2210_s26, %s179_s8  }
   0x9   : > { %p2297_p5 = por %p190_p2, %p189_p0  ;;  %p2301_p6 = por %p196_p4, %p195_p3 }
   0xa   : > { %p1843_p7 = scmp.ge.s32.totalorder %s2214_s27, 1  ;;  %p240_p8 = scmp.lt.s32.totalorder %s2214_s27, 3 }
   0xc   : > { %p241_p9 = pnand %p1843_p7, %p240_p8 }
   0xe   : > { %244 = sbr.rel (%p241_p9) target bundleno = 1439 (0x59f), region = 48 }
  0x13   : > { %v278_v0 = vld [vmem:[%s3005_s1] sm:$0xf]  ;;  %v3012_v1 = vmov 0   ;;  %p272_p10 = scmp.lt.s32.totalorder %s2280_s28, 1  ;;  %vm353_vm0 = vcmask 1043456   ;;  %v384_v24 = vlaneseq  ;;  %vm588_vm1 = vcmask 1041408  }
  0x14   : > { %1944 = vset.pattern.permute.xlu0 %v3012_v1  ;;  %v279_v2 = vmul.f32 2.0, %v278_v0  ;;  %627 = vmatprep.mubr.bf16.mxu0 %v3012_v1  ;;  %v2217_v22 = vmov 839922192   ;;  %v1946_v39 = vld [vmem:[%s3006_s2] sm:$0xff]   ;;  %vm515_vm2 = vcmask 31744   ;;  %v1947_v40 = vld [vmem:[%s3006_s2 + $0x8] sm:$0xff]  }
  0x15   : > { %1945 = vset.pattern.permute.xlu1 %v3012_v1  ;;  %s273_s15 = scalar_select %p272_p10, %s2280_s28, 1  ;;  %v382_v23 = vunpack.c.l.s4 %v2217_v22  ;;  %v385_v28 = vshrl.u32 %v384_v24, 7  ;;  %v1948_v41 = vld [vmem:[%s3006_s2 + $0x10] sm:$0xff]   ;;  %v1949_v42 = vld [vmem:[%s3006_s2 + $0x18] sm:$0xff]   ;;  %v1950_v43 = vld [vmem:[%s3006_s2 + $0x20] sm:$0xff]  }
  0x16   : > { %379 = vperm.xlu0 %1944, %v279_v2   ;;  %v1951_v44 = vld [vmem:[%s3006_s2 + $0x28] sm:$0xff]   ;;  %v1952_v45 = vld [vmem:[%s3006_s2 + $0x30] sm:$0xff]   ;;  %v1953_v46 = vld [vmem:[%s3006_s2 + $0x38] sm:$0xff]   ;;  %s269_s22 = sand.u32 1, %s2206_s25   ;;  %s1902_s29 = sshll.u32 %s2280_s28, 7 }
  0x17   : > { %s1901_s16 = sshll.u32 %s273_s15, 3  ;;  %v383_v27 = vunpack.c.0.s8 %v382_v23  ;;  %v1954_v47 = vld [vmem:[%s3006_s2 + $0x40] sm:$0xff]   ;;  %v1955_v48 = vld [vmem:[%s3006_s2 + $0x48] sm:$0xff]   ;;  %v1956_v49 = vld [vmem:[%s3006_s2 + $0x50] sm:$0xff]   ;;  %s1844_s23 = sshll.u32 %s269_s22, 3 }
  0x18   : > { %s276_s19 = scalar_lea.vmem %s3004_s0, %s1901_s16  ;;  %v1957_v50 = vld [vmem:[%s3006_s2 + $0x58] sm:$0xff]   ;;  %v1958_v51 = vld [vmem:[%s3006_s2 + $0x60] sm:$0xff]   ;;  %v1959_v52 = vld [vmem:[%s3006_s2 + $0x68] sm:$0xff]   ;;  %s271_s8 = scalar_lea.vmem [#allocation2], %s1844_s23 }
  0x19   : > { %v348_v3 = vld [vmem:[%s276_s19] sm:$0xff]  ;;  %v386_v30 = vsub.s32 %v383_v27, %v385_v28  ;;  %v1960_v53 = vld [vmem:[%s3006_s2 + $0x70] sm:$0xff]   ;;  %v1961_v54 = vld [vmem:[%s3006_s2 + $0x78] sm:$0xff]   ;;  %s1781_s9 = sshll.u32 %s271_s8, 4  ;;  %s1779_s15 = scalar_lea.hbm %s3011_s7, %s1902_s29  ;;  %s1782_s9 = int_to_ptr.vmem [resolvable:$true] %s1781_s9 }
  0x1a   : > { %v349_v4 = vmul.f32 %v348_v3, %v348_v3  ;;  %s1767_s16 = scalar_lea.sflag [#allocation3], %s269_s22  ;;  %s2154_s17 = scalar_lea.vmem %s1782_s9, 128 }
  0x1b   : > { %p2155_p11 = scmp.ne.s32.totalorder %s1782_s9, %s2154_s17  ;;  %s2218_s18 = smov [#allocation2]  }
  0x1c   : > { %v351_v5 = vcombine.high %v349_v4, %v349_v4  ;;  %v354_v6 = vsel %vm353_vm0, %v349_v4, 0.0  ;;  %v1962_v4 = vld [vmem:[%s3006_s2 + $0x80] sm:$0xff]   ;;  %s2158_s19 = sshll.u32 %s2218_s18, 4  ;;  %s2159_s19 = int_to_ptr.vmem [resolvable:$false] %s2158_s19 }
  0x1d   : > { %v355_v8 = vrot.slane %v354_v6, 4  ;;  %p2156_p12 = pnand %p2155_p11, %p2297_p5  ;;  %s2160_s28 = scalar_lea.vmem %s2159_s19, 256 }
  0x1e   : > { %v361_v7 = vsel %vm353_vm0, %v351_v5, 0.0  ;;  %p2161_p0 = scmp.lt.s32.totalorder %s1782_s9, %s2159_s19  ;;  %p2162_p1 = scmp.lt.s32.totalorder %s2160_s28, %s2154_s17 }
  0x1f   : > { %v362_v9 = vrot.slane %v361_v7, 4  ;;  %v356_v10 = vadd.f32 %v355_v8, %v354_v6  ;;  %p2157_p13 = pneg %p2156_p12 }
  0x20   : > { %p2163_p2 = por %p2162_p1, %p2161_p0 }
  0x21   : > { %v363_v11 = vadd.f32 %v362_v9, %v361_v7  ;;  %v357_v12 = vrot.slane %v356_v10, 2 }
  0x22   : > { %p2164_p3 = pnand %p2163_p2, %p2157_p13 }
  0x23   : > { %v364_v13 = vrot.slane %v363_v11, 2  ;;  %v358_v14 = vadd.f32 %v357_v12, %v356_v10 }
  0x25   : > { %v365_v15 = vadd.f32 %v364_v13, %v363_v11  ;;  %v359_v16 = vrot.slane %v358_v14, 1 }
  0x27   : > { %v366_v17 = vrot.slane %v365_v15, 1  ;;  %v360_v18 = vadd.f32 %v359_v16, %v358_v14 }
  0x29   : > { %v367_v19 = vadd.f32 %v366_v17, %v365_v15  ;;  %v368_v20 = vmax.f32 %v360_v18, 1e-24  ;;  %v1963_v18 = vld [vmem:[%s3006_s2 + $0x88] sm:$0xff]  }
  0x2b   : > { %v369_v21 = vmax.f32 %v367_v19, 1e-24  ;;  %1970 = vrsqrt.f32 %v368_v20 }
  0x2d   : > { %1972 = vrsqrt.f32 %v369_v21 }
  0x38   : > { %v1971_v25 = vpop.eup %1970 }
  0x3a   : > { %v1973_v26 = vpop.eup %1972 }
  0x3b   : > { %v374_v29 = vcombine.low %v1971_v25, %v1973_v26 }
  0x3d   : > { %v376_v31 = vmul.f32 %v374_v29, %v348_v3 }
  0x91   : > { %v380_v32 = vpop.permute.xlu0 %379 }
  0x92   : > { %v387_v33 = vrot.slane %v380_v32, %v386_v30 }
  0x94   : > { %v389_v34 = vmul.f32 %v387_v33, %v376_v31 }
  0x96   : > { %v391_v35 = vcombine.high %v389_v34, %v389_v34  ;;  %v393_v36 = vpack.c.bf16 %v389_v34, %v389_v34 }
  0x98   : > { %v394_v37 = vpack.c.bf16 %v391_v35, %v391_v35  ;;  %v590_v38 = vsel %vm588_vm1, %v393_v36, 0 }
  0x9a   : > { %1871 = vmatprep.subr.msk.bf16.mxu0 %vm588_vm1, %v394_v37 }
  0x9b   : > { %610 = vmatpush1.bf16.msra.mxu0 %v590_v38 }
  0x9e   : > { %1872 = vmatmul.mubr.msk.bf16.vlgmr.msra.gmra.mxu0 %vm515_vm2, %v1946_v39 }
  0x9f   : > { %637 = vmatprep.mubr.bf16.mxu0 %v3012_v1 }
  0xa6   : > { %1873 = vmatmul.mubr.msk.bf16.gmra.mxu0 %vm515_vm2, %v1947_v40 }
  0xa7   : > { %647 = vmatprep.mubr.bf16.mxu0 %v3012_v1 }
  0xae   : > { %1874 = vmatmul.mubr.msk.bf16.gmra.mxu0 %vm515_vm2, %v1948_v41 }
  0xaf   : > { %657 = vmatprep.mubr.bf16.mxu0 %v3012_v1 }
  0xb6   : > { %1875 = vmatmul.mubr.msk.bf16.gmra.mxu0 %vm515_vm2, %v1949_v42 }
  0xb7   : > { %667 = vmatprep.mubr.bf16.mxu0 %v3012_v1 }
  0xbe   : > { %1876 = vmatmul.mubr.msk.bf16.gmra.mxu0 %vm515_vm2, %v1950_v43 }
  0xbf   : > { %677 = vmatprep.mubr.bf16.mxu0 %v3012_v1 }
  0xc6   : > { %1877 = vmatmul.mubr.msk.bf16.gmra.mxu0 %vm515_vm2, %v1951_v44  ;;  %v1964_v44 = vld [vmem:[%s3006_s2 + $0x90] sm:$0xff]  }
  0xc7   : > { %687 = vmatprep.mubr.bf16.mxu0 %v3012_v1 }
  0xce   : > { %1878 = vmatmul.mubr.msk.bf16.gmra.mxu0 %vm515_vm2, %v1952_v45 }
  0xcf   : > { %697 = vmatprep.mubr.bf16.mxu0 %v3012_v1 }
  0xd6   : > { %1879 = vmatmul.mubr.msk.bf16.gmra.mxu0 %vm515_vm2, %v1953_v46 }
  0xd7   : > { %707 = vmatprep.mubr.bf16.mxu0 %v3012_v1 }
  0xde   : > { %1880 = vmatmul.mubr.msk.bf16.gmra.mxu0 %vm515_vm2, %v1954_v47 }
  0xdf   : > { %717 = vmatprep.mubr.bf16.mxu0 %v3012_v1 }
  0xe6   : > { %1881 = vmatmul.mubr.msk.bf16.gmra.mxu0 %vm515_vm2, %v1955_v48 }
  0xe7   : > { %727 = vmatprep.mubr.bf16.mxu0 %v3012_v1 }
  0xee   : > { %1882 = vmatmul.mubr.msk.bf16.gmra.mxu0 %vm515_vm2, %v1956_v49 }
  0xef   : > { %737 = vmatprep.mubr.bf16.mxu0 %v3012_v1 }
  0xf6   : > { %1883 = vmatmul.mubr.msk.bf16.gmra.mxu0 %vm515_vm2, %v1957_v50 }
  0xf7   : > { %747 = vmatprep.mubr.bf16.mxu0 %v3012_v1 }
  0xfe   : > { %1884 = vmatmul.mubr.msk.bf16.gmra.mxu0 %vm515_vm2, %v1958_v51 }
  0xff   : > { %757 = vmatprep.mubr.bf16.mxu0 %v3012_v1 }
 0x106   : > { %1885 = vmatmul.mubr.msk.bf16.gmra.mxu0 %vm515_vm2, %v1959_v52 }
 0x107   : > { %767 = vmatprep.mubr.bf16.mxu0 %v3012_v1 }
 0x10e   : > { %1886 = vmatmul.mubr.msk.bf16.gmra.mxu0 %vm515_vm2, %v1960_v53 }
 0x10f   : > { %777 = vmatprep.mubr.bf16.mxu0 %v3012_v1 }
 0x116   : > { %1887 = vmatmul.mubr.msk.bf16.gmra.mxu0 %vm515_vm2, %v1961_v54 }
 0x117   : > { %787 = vmatprep.mubr.bf16.mxu0 %v3012_v1 }
 0x11e   : > { %1888 = vmatmul.mubr.msk.bf16.gmra.mxu0 %vm515_vm2, %v1962_v4 }
 0x11f   : > { %797 = vmatprep.mubr.bf16.mxu0 %v3012_v1 }
 0x126   : > { %1889 = vmatmul.mubr.msk.bf16.gmra.mxu0 %vm515_vm2, %v1963_v18 }
 0x127   : > { %807 = vmatprep.mubr.bf16.mxu0 %v3012_v1 }
 0x12e   : > { %1890 = vmatmul.mubr.msk.bf16.gmra.mxu0 %vm515_vm2, %v1964_v44 }
 0x12f   : > { %817 = vmatprep.mubr.bf16.mxu0 %v3012_v1 }
 0x15e   : > { %v629_v55 = vpop.f32.mrf.mxu0 }
 0x160   : > { %v631_v56 = vpop.f32.mrf.mxu0 }
 0x162   : > { %v633_v57 = vpop.f32.mrf.mxu0 }
 0x163   : > { %v868_v58 = vmax.f32 %v629_v55, %v633_v57 }
 0x164   : > { %v635_v59 = vpop.f32.mrf.mxu0 }
 0x165   : > { %v877_v60 = vmax.f32 %v631_v56, %v635_v59 }
 0x166   : > { %v639_v61 = vpop.f32.mrf.mxu0 }
 0x167   : > { %v869_v62 = vmax.f32 %v868_v58, %v639_v61 }
 0x168   : > { %v2400_v63 = vpop.f32.mrf.mxu0 }
 0x169   : > { %v878_v0 = vmax.f32 %v877_v60, %v2400_v63 }
 0x16a   : > { %v643_v2 = vpop.f32.mrf.mxu0 }
 0x16b   : > { %v870_v3 = vmax.f32 %v869_v62, %v643_v2  ;;  %v1965_v62 = vld [vmem:[%s3006_s2 + $0x98] sm:$0xff]  }
 0x16c   : > { %v2406_v5 = vpop.f32.mrf.mxu0  ;;  %1891 = vmatmul.mubr.msk.bf16.gmra.mxu0 %vm515_vm2, %v1965_v62 }
 0x16d   : > { %v871_v6 = vrot.slane %v870_v3, 4  ;;  %v879_v7 = vmax.f32 %v878_v0, %v2406_v5  ;;  %827 = vmatprep.mubr.bf16.mxu0 %v3012_v1 }
 0x16e   : > { %v2410_v8 = vpop.f32.mrf.mxu0 }
 0x16f   : > { %v872_v9 = vmax.f32 %v870_v3, %v871_v6  ;;  %v880_v10 = vrot.slane %v879_v7, 4 }
 0x170   : > { %v2413_v11 = vpop.f32.mrf.mxu0 }
 0x171   : > { %v873_v12 = vrot.slane %v872_v9, 2  ;;  %v881_v13 = vmax.f32 %v879_v7, %v880_v10 }
 0x172   : > { %v2415_v14 = vpop.f32.mrf.mxu0 }
 0x173   : > { %v874_v15 = vmax.f32 %v872_v9, %v873_v12  ;;  %v882_v16 = vrot.slane %v881_v13, 2  ;;  %v886_v17 = vmax.f32 %v2410_v8, %v2415_v14 }
 0x174   : > { %v2422_v19 = vpop.f32.mrf.mxu0 }
 0x175   : > { %v875_v20 = vrot.slane %v874_v15, 1  ;;  %v883_v21 = vmax.f32 %v881_v13, %v882_v16  ;;  %v895_v22 = vmax.f32 %v2413_v11, %v2422_v19 }
 0x176   : > { %v2427_v23 = vpop.f32.mrf.mxu0 }
 0x177   : > { %v876_v24 = vmax.f32 %v874_v15, %v875_v20  ;;  %v884_v25 = vrot.slane %v883_v21, 1  ;;  %v887_v26 = vmax.f32 %v886_v17, %v2427_v23 }
 0x178   : > { %v2431_v27 = vpop.f32.mrf.mxu0 }
 0x179   : > { %v940_v28 = vsub.f32 %v629_v55, %v876_v24  ;;  %v942_v29 = vsub.f32 %v633_v57, %v876_v24  ;;  %v944_v30 = vsub.f32 %v639_v61, %v876_v24  ;;  %v946_v31 = vsub.f32 %v643_v2, %v876_v24 }
 0x17a   : > { %v885_v32 = vmax.f32 %v883_v21, %v884_v25  ;;  %v896_v33 = vmax.f32 %v895_v22, %v2431_v27  ;;  %v2434_v34 = vpop.f32.mrf.mxu0 }
 0x17b   : > { %v972_v35 = vmul.f32 1.442695, %v940_v28  ;;  %v976_v36 = vmul.f32 1.442695, %v942_v29  ;;  %v980_v37 = vmul.f32 1.442695, %v944_v30  ;;  %v888_v38 = vmax.f32 %v887_v26, %v2434_v34 }
 0x17c   : > { %v984_v39 = vmul.f32 1.442695, %v946_v31  ;;  %v941_v40 = vsub.f32 %v631_v56, %v885_v32  ;;  %v943_v41 = vsub.f32 %v635_v59, %v885_v32  ;;  %v945_v42 = vsub.f32 %v2400_v63, %v885_v32  ;;  %v2438_v43 = vpop.f32.mrf.mxu0  ;;  %v1966_v31 = vld [vmem:[%s3006_s2 + $0xa0] sm:$0xff]  }
 0x17d   : > { %1974 = vpow2.f32 %v972_v35  ;;  %v947_v45 = vsub.f32 %v2406_v5, %v885_v32  ;;  %v889_v46 = vrot.slane %v888_v38, 4  ;;  %v897_v47 = vmax.f32 %v896_v33, %v2438_v43  ;;  %1892 = vmatmul.mubr.msk.bf16.gmra.mxu0 %vm515_vm2, %v1966_v31 }
 0x17e   : > { %1976 = vpow2.f32 %v976_v36  ;;  %v974_v48 = vmul.f32 1.442695, %v941_v40  ;;  %v978_v49 = vmul.f32 1.442695, %v943_v41  ;;  %v2445_v50 = vpop.f32.mrf.mxu0  ;;  %v982_v53 = vmul.f32 1.442695, %v945_v42  ;;  %837 = vmatprep.mubr.bf16.mxu0 %v3012_v1 }
 0x17f   : > { %1978 = vpow2.f32 %v980_v37  ;;  %v890_v51 = vmax.f32 %v888_v38, %v889_v46  ;;  %v898_v52 = vrot.slane %v897_v47, 4  ;;  %v986_v57 = vmul.f32 1.442695, %v947_v45 }
 0x180   : > { %1980 = vpow2.f32 %v984_v39  ;;  %v2449_v54 = vpop.f32.mrf.mxu0 }
 0x181   : > { %1982 = vpow2.f32 %v974_v48  ;;  %v891_v55 = vrot.slane %v890_v51, 2  ;;  %v899_v56 = vmax.f32 %v897_v47, %v898_v52 }
 0x182   : > { %1984 = vpow2.f32 %v978_v49  ;;  %v2451_v58 = vpop.f32.mrf.mxu0 }
 0x183   : > { %v892_v59 = vmax.f32 %v890_v51, %v891_v55  ;;  %v900_v60 = vrot.slane %v899_v56, 2  ;;  %v904_v61 = vmax.f32 %v2445_v50, %v2451_v58  ;;  %1986 = vpow2.f32 %v982_v53  ;;  %v1967_v53 = vld [vmem:[%s3006_s2 + $0xa8] sm:$0xff]  }
 0x184   : > { %v2458_v63 = vpop.f32.mrf.mxu0  ;;  %1988 = vpow2.f32 %v986_v57 }
 0x185   : > { %v893_v0 = vrot.slane %v892_v59, 1  ;;  %v901_v2 = vmax.f32 %v899_v56, %v900_v60  ;;  %v913_v3 = vmax.f32 %v2449_v54, %v2458_v63  ;;  %1893 = vmatmul.mubr.msk.bf16.gmra.mxu0 %vm515_vm2, %v1967_v53 }
 0x186   : > { %v2462_v4 = vpop.f32.mrf.mxu0  ;;  %847 = vmatprep.mubr.bf16.mxu0 %v3012_v1 }
 0x187   : > { %v894_v5 = vmax.f32 %v892_v59, %v893_v0  ;;  %v902_v6 = vrot.slane %v901_v2, 1  ;;  %v905_v7 = vmax.f32 %v904_v61, %v2462_v4 }
 0x188   : > { %v2467_v9 = vpop.f32.mrf.mxu0 }
 0x189   : > { %v948_v10 = vsub.f32 %v2410_v8, %v894_v5  ;;  %v950_v12 = vsub.f32 %v2415_v14, %v894_v5  ;;  %v952_v13 = vsub.f32 %v2427_v23, %v894_v5  ;;  %v954_v15 = vsub.f32 %v2434_v34, %v894_v5 }
 0x18a   : > { %v2473_v16 = vpop.eup %1974  ;;  %v903_v17 = vmax.f32 %v901_v2, %v902_v6  ;;  %v914_v18 = vmax.f32 %v913_v3, %v2467_v9  ;;  %v2476_v20 = vpop.f32.mrf.mxu0 }
 0x18b   : > { %v2478_v21 = vpop.eup %1976  ;;  %v988_v22 = vmul.f32 1.442695, %v948_v10  ;;  %v992_v24 = vmul.f32 1.442695, %v950_v12  ;;  %v996_v25 = vmul.f32 1.442695, %v952_v13  ;;  %v906_v8 = vmax.f32 %v905_v7, %v2476_v20 }
 0x18c   : > { %v2481_v26 = vpop.eup %1978  ;;  %v1036_v14 = vadd.f32 %v2478_v21, %v2473_v16  ;;  %v1000_v23 = vmul.f32 1.442695, %v954_v15  ;;  %v949_v28 = vsub.f32 %v2413_v11, %v903_v17  ;;  %v951_v29 = vsub.f32 %v2422_v19, %v903_v17  ;;  %v2487_v30 = vpop.f32.mrf.mxu0 }
 0x18d   : > { %v2492_v32 = vpop.eup %1980  ;;  %1990 = vpow2.f32 %v988_v22  ;;  %v953_v33 = vsub.f32 %v2431_v27, %v903_v17  ;;  %v955_v34 = vsub.f32 %v2438_v43, %v903_v17  ;;  %v907_v35 = vrot.slane %v906_v8, 4 }
 0x18e   : > { %v2496_v36 = vpop.eup %1982  ;;  %v1037_v11 = vadd.f32 %v2481_v26, %v1036_v14  ;;  %1992 = vpow2.f32 %v992_v24  ;;  %v990_v19 = vmul.f32 1.442695, %v949_v28  ;;  %v994_v37 = vmul.f32 1.442695, %v951_v29  ;;  %v2499_v38 = vpop.f32.mrf.mxu0 }
 0x18f   : > { %v2502_v39 = vpop.eup %1984  ;;  %1994 = vpow2.f32 %v996_v25  ;;  %v998_v40 = vmul.f32 1.442695, %v953_v33  ;;  %v908_v41 = vmax.f32 %v906_v8, %v907_v35  ;;  %v915_v43 = vmax.f32 %v914_v18, %v2487_v30 }
 0x190   : > { %v1038_v27 = vadd.f32 %v2492_v32, %v1037_v11  ;;  %v1045_v42 = vadd.f32 %v2502_v39, %v2496_v36  ;;  %1996 = vpow2.f32 %v1000_v23  ;;  %v2509_v44 = vpop.f32.mrf.mxu0  ;;  %v2511_v45 = vpop.eup %1986  ;;  %v1002_v46 = vmul.f32 1.442695, %v955_v34  ;;  %v1968_v34 = vld [vmem:[%s3006_s2 + $0xb0] sm:$0xff]  }
 0x191   : > { %1998 = vpow2.f32 %v990_v19  ;;  %v909_v47 = vrot.slane %v908_v41, 2  ;;  %v916_v51 = vrot.slane %v915_v43, 4  ;;  %v2519_v55 = vpop.eup %1988  ;;  %1894 = vmatmul.mubr.msk.bf16.gmra.mxu0 %vm515_vm2, %v1968_v34 }
 0x192   : > { %v1039_v48 = vrot.slane %v1038_v27, 4  ;;  %v1046_v49 = vadd.f32 %v2511_v45, %v1045_v42  ;;  %2000 = vpow2.f32 %v994_v37  ;;  %v2514_v52 = vpop.f32.mrf.mxu0  ;;  %857 = vmatprep.mubr.bf16.mxu0 %v3012_v1 }
 0x193   : > { %v910_v56 = vmax.f32 %v908_v41, %v909_v47  ;;  %v922_v57 = vmax.f32 %v2499_v38, %v2514_v52  ;;  %2002 = vpow2.f32 %v998_v40  ;;  %v917_v61 = vmax.f32 %v915_v43, %v916_v51 }
 0x194   : > { %v1040_v59 = vadd.f32 %v1039_v48, %v1038_v27  ;;  %v1047_v60 = vadd.f32 %v2519_v55, %v1046_v49  ;;  %v2524_v62 = vpop.f32.mrf.mxu0  ;;  %2004 = vpow2.f32 %v1002_v46 }
 0x195   : > { %v911_v0 = vrot.slane %v910_v56, 1  ;;  %v931_v2 = vmax.f32 %v2509_v44, %v2524_v62  ;;  %v918_v6 = vrot.slane %v917_v61, 2 }
 0x196   : > { %v1041_v3 = vrot.slane %v1040_v59, 2  ;;  %v1048_v5 = vrot.slane %v1047_v60, 4  ;;  %v2528_v7 = vpop.f32.mrf.mxu0 }
 0x197   : > { %v912_v10 = vmax.f32 %v910_v56, %v911_v0  ;;  %v923_v12 = vmax.f32 %v922_v57, %v2528_v7  ;;  %v919_v17 = vmax.f32 %v917_v61, %v918_v6 }
 0x198   : > { %v1042_v13 = vadd.f32 %v1041_v3, %v1040_v59  ;;  %v1049_v15 = vadd.f32 %v1048_v5, %v1047_v60  ;;  %v2533_v18 = vpop.f32.mrf.mxu0 }
 0x199   : > { %v956_v22 = vsub.f32 %v2445_v50, %v912_v10  ;;  %v958_v24 = vsub.f32 %v2451_v58, %v912_v10  ;;  %v960_v25 = vsub.f32 %v2462_v4, %v912_v10  ;;  %v962_v8 = vsub.f32 %v2476_v20, %v912_v10 }
 0x19a   : > { %v2539_v14 = vpop.eup %1990  ;;  %v1043_v23 = vrot.slane %v1042_v13, 1  ;;  %v1050_v28 = vrot.slane %v1049_v15, 2  ;;  %v920_v29 = vrot.slane %v919_v17, 1  ;;  %v932_v31 = vmax.f32 %v931_v2, %v2533_v18  ;;  %v2542_v33 = vpop.f32.mrf.mxu0 }
 0x19b   : > { %v2547_v50 = vpop.eup %1992  ;;  %v1004_v58 = vmul.f32 1.442695, %v956_v22  ;;  %v1008_v35 = vmul.f32 1.442695, %v958_v24  ;;  %v924_v4 = vmax.f32 %v923_v12, %v2542_v33  ;;  %v1012_v40 = vmul.f32 1.442695, %v960_v25 }
 0x19c   : > { %v2550_v20 = vpop.eup %1994  ;;  %v1044_v11 = vadd.f32 %v1043_v23, %v1042_v13  ;;  %v1051_v19 = vadd.f32 %v1050_v28, %v1049_v15  ;;  %v1054_v37 = vadd.f32 %v2547_v50, %v2539_v14  ;;  %v2554_v41 = vpop.f32.mrf.mxu0  ;;  %v1016_v42 = vmul.f32 1.442695, %v962_v8  ;;  %v1969_v15 = vld [vmem:[%s3006_s2 + $0xb8] sm:$0xff]  }
 0x19d   : > { %v2556_v27 = vpop.eup %1996  ;;  %2006 = vpow2.f32 %v1004_v58  ;;  %v921_v43 = vmax.f32 %v919_v17, %v920_v29  ;;  %v933_v46 = vmax.f32 %v932_v31, %v2554_v41  ;;  %v925_v51 = vrot.slane %v924_v4, 4  ;;  %1895 = vmatmul.mubr.msk.bf16.gmra.mxu0 %vm515_vm2, %v1969_v15 }
 0x19e   : > { %v2559_v47 = vpop.eup %1998  ;;  %2008 = vrcp.f32 %v1044_v11  ;;  %v1052_v48 = vrot.slane %v1051_v19, 1  ;;  %v1055_v49 = vadd.f32 %v2550_v20, %v1054_v37  ;;  %v2562_v53 = vpop.f32.mrf.mxu0 }
 0x19f   : > { %v2565_v56 = vpop.eup %2000  ;;  %2010 = vpow2.f32 %v1008_v35  ;;  %v957_v57 = vsub.f32 %v2449_v54, %v921_v43  ;;  %v959_v59 = vsub.f32 %v2458_v63, %v921_v43  ;;  %v961_v60 = vsub.f32 %v2467_v9, %v921_v43 }
 0x1a0   : > { %v1053_v61 = vadd.f32 %v1052_v48, %v1051_v19  ;;  %v1056_v0 = vadd.f32 %v2556_v27, %v1055_v49  ;;  %v1063_v2 = vadd.f32 %v2565_v56, %v2559_v47  ;;  %v2574_v3 = vpop.f32.mrf.mxu0  ;;  %v2576_v5 = vpop.eup %2002  ;;  %2012 = vpow2.f32 %v1012_v40 }
 0x1a1   : > { %v963_v6 = vsub.f32 %v2487_v30, %v921_v43  ;;  %v1006_v54 = vmul.f32 1.442695, %v957_v57  ;;  %v1010_v10 = vmul.f32 1.442695, %v959_v59  ;;  %2014 = vpow2.f32 %v1016_v42  ;;  %v2585_v17 = vpop.eup %2004 }
 0x1a2   : > { %v1057_v63 = vrot.slane %v1056_v0, 4  ;;  %v1064_v9 = vadd.f32 %v2576_v5, %v1063_v2  ;;  %v1014_v12 = vmul.f32 1.442695, %v961_v60  ;;  %v2580_v13 = vpop.f32.mrf.mxu0  ;;  %v926_v22 = vmax.f32 %v924_v4, %v925_v51 }
 0x1a3   : > { %2016 = vpow2.f32 %v1006_v54  ;;  %v934_v24 = vrot.slane %v933_v46, 4  ;;  %v1018_v8 = vmul.f32 1.442695, %v963_v6 }
 0x1a4   : > { %v1058_v25 = vadd.f32 %v1057_v63, %v1056_v0  ;;  %v1065_v30 = vadd.f32 %v2585_v17, %v1064_v9  ;;  %2018 = vpow2.f32 %v1010_v10  ;;  %v2588_v23 = vpop.f32.mrf.mxu0  ;;  %v927_v28 = vrot.slane %v926_v22, 2 }
 0x1a5   : > { %2020 = vrcp.f32 %v1053_v61  ;;  %v935_v29 = vmax.f32 %v933_v46, %v934_v24 }
 0x1a6   : > { %v1059_v31 = vrot.slane %v1058_v25, 2  ;;  %v1066_v34 = vrot.slane %v1065_v30, 4  ;;  %2022 = vpow2.f32 %v1014_v12  ;;  %v2590_v58 = vpop.f32.mrf.mxu0  ;;  %v928_v35 = vmax.f32 %v926_v22, %v927_v28 }
 0x1a7   : > { %v936_v4 = vrot.slane %v935_v29, 2  ;;  %2024 = vpow2.f32 %v1018_v8 }
 0x1a8   : > { %v1060_v11 = vadd.f32 %v1059_v31, %v1058_v25  ;;  %v1067_v19 = vadd.f32 %v1066_v34, %v1065_v30  ;;  %v2593_v37 = vpop.f32.mrf.mxu0  ;;  %v929_v40 = vrot.slane %v928_v35, 1 }
 0x1a9   : > { %v937_v42 = vmax.f32 %v935_v29, %v936_v4 }
 0x1aa   : > { %v2595_v43 = vpop.eup %2006  ;;  %v1061_v48 = vrot.slane %v1060_v11, 1  ;;  %v1068_v46 = vrot.slane %v1067_v19, 2  ;;  %v2597_v49 = vpop.f32.mrf.mxu0  ;;  %v930_v57 = vmax.f32 %v928_v35, %v929_v40 }
 0x1ab   : > { %v2599_v51 = vpop.eup %2008  ;;  %v938_v59 = vrot.slane %v937_v42, 1 }
 0x1ac   : > { %v2601_v60 = vpop.eup %2010  ;;  %v1062_v61 = vadd.f32 %v1061_v48, %v1060_v11  ;;  %v1069_v0 = vadd.f32 %v1068_v46, %v1067_v19  ;;  %v2603_v2 = vpop.f32.mrf.mxu0  ;;  %v2607_v6 = vmul.f32 %v2599_v51, %v2481_v26  ;;  %v2611_v54 = vmul.f32 %v2599_v51, %v2492_v32 }
 0x1ad   : > { %v1072_v10 = vadd.f32 %v2601_v60, %v2595_v43  ;;  %v964_v63 = vsub.f32 %v2499_v38, %v930_v57  ;;  %v966_v9 = vsub.f32 %v2514_v52, %v930_v57  ;;  %v968_v12 = vsub.f32 %v2528_v7, %v930_v57  ;;  %v2618_v15 = vpop.eup %2012 }
 0x1ae   : > { %3016 = vst [vmem:[#allocation5_spill] sm:$0xff] %v2607_v6  ;;  %3017 = vst [vmem:[#allocation6_spill] sm:$0xff] %v2611_v54  ;;  %2026 = vrcp.f32 %v1062_v61  ;;  %v1070_v22 = vrot.slane %v1069_v0, 1  ;;  %v970_v26 = vsub.f32 %v2542_v33, %v930_v57  ;;  %v939_v24 = vmax.f32 %v937_v42, %v938_v59  ;;  %v2621_v25 = vpop.f32.mrf.mxu0  ;;  %v2623_v32 = vpop.eup %2014 }
 0x1af   : > { %v1073_v30 = vadd.f32 %v2618_v15, %v1072_v10  ;;  %v1020_v8 = vmul.f32 1.442695, %v964_v63  ;;  %v1024_v28 = vmul.f32 1.442695, %v966_v9  ;;  %v1028_v38 = vmul.f32 1.442695, %v968_v12 }
 0x1b0   : > { %v2626_v29 = vpop.eup %2016  ;;  %v1071_v52 = vadd.f32 %v1070_v22, %v1069_v0  ;;  %v1032_v7 = vmul.f32 1.442695, %v970_v26  ;;  %v965_v31 = vsub.f32 %v2509_v44, %v939_v24  ;;  %v967_v34 = vsub.f32 %v2524_v62, %v939_v24  ;;  %v2630_v35 = vpop.f32.mrf.mxu0 }
 0x1b1   : > { %v2632_v33 = vpop.eup %2018  ;;  %v1074_v4 = vadd.f32 %v2623_v32, %v1073_v30  ;;  %2028 = vpow2.f32 %v1020_v8  ;;  %v969_v11 = vsub.f32 %v2533_v18, %v939_v24  ;;  %v971_v19 = vsub.f32 %v2554_v41, %v939_v24 }
 0x1b2   : > { %v2021_v40 = vpop.eup %2020  ;;  %2030 = vrcp.f32 %v1071_v52  ;;  %v1081_v42 = vadd.f32 %v2632_v33, %v2626_v29  ;;  %v1022_v48 = vmul.f32 1.442695, %v965_v31  ;;  %v2639_v44 = vpop.f32.mrf.mxu0  ;;  %v1026_v57 = vmul.f32 1.442695, %v967_v34 }
 0x1b3   : > { %v2641_v62 = vpop.eup %2022  ;;  %v1075_v46 = vrot.slane %v1074_v4, 4  ;;  %2032 = vpow2.f32 %v1024_v28  ;;  %v1030_v61 = vmul.f32 1.442695, %v969_v11  ;;  %v1034_v10 = vmul.f32 1.442695, %v971_v19 }
 0x1b4   : > { %v1082_v59 = vadd.f32 %v2641_v62, %v1081_v42  ;;  %2034 = vpow2.f32 %v1028_v38  ;;  %v2644_v18 = vpop.f32.mrf.mxu0  ;;  %v2646_v41 = vpop.eup %2024  ;;  %v2649_v63 = vmul.f32 %v2021_v40, %v2511_v45  ;;  %v2655_v22 = vmul.f32 %v2021_v40, %v2519_v55 }
 0x1b5   : > { %v1076_v0 = vadd.f32 %v1075_v46, %v1074_v4  ;;  %2036 = vpow2.f32 %v1032_v7  ;;  %v2658_v26 = vmul.f32 %v2021_v40, %v2496_v36  ;;  %v2661_v30 = vmul.f32 %v2021_v40, %v2502_v39 }
 0x1b6   : > { %3018 = vst [vmem:[#allocation7_spill] sm:$0xff] %v2649_v63  ;;  %v1083_v9 = vadd.f32 %v2646_v41, %v1082_v59  ;;  %2038 = vpow2.f32 %v1022_v48  ;;  %v2652_v12 = vpop.f32.mrf.mxu0  ;;  %3019 = vst [vmem:[#allocation8_spill] sm:$0xff] %v2655_v22  ;;  %v2665_v45 = vmul.f32 %v2599_v51, %v2473_v16  ;;  %v2671_v38 = vmul.f32 %v2599_v51, %v2478_v21 }
 0x1b7   : > { %3020 = vst [vmem:[#allocation9_spill] sm:$0xff] %v2658_v26  ;;  %v1077_v24 = vrot.slane %v1076_v0, 2  ;;  %2040 = vpow2.f32 %v1026_v57  ;;  %3021 = vst [vmem:[#allocation10_spill] sm:$0xff] %v2661_v30 }
 0x1b8   : > { %3022 = vst [vmem:[#allocation11_spill] sm:$0xff] %v2665_v45  ;;  %v1084_v8 = vrot.slane %v1083_v9, 4  ;;  %v2667_v28 = vpop.f32.mrf.mxu0  ;;  %3023 = vst [vmem:[#allocation12_spill] sm:$0xff] %v2671_v38  ;;  %2042 = vpow2.f32 %v1030_v61 }
 0x1b9   : > { %v1078_v55 = vadd.f32 %v1077_v24, %v1076_v0  ;;  %2044 = vpow2.f32 %v1034_v10 }
 0x1ba   : > { %v1085_v36 = vadd.f32 %v1084_v8, %v1083_v9  ;;  %v2673_v52 = vpop.f32.mrf.mxu0 }
 0x1bb   : > { %v2027_v7 = vpop.eup %2026  ;;  %v1079_v31 = vrot.slane %v1078_v55, 1 }
 0x1bc   : > { %v1086_v39 = vrot.slane %v1085_v36, 2  ;;  %v2675_v34 = vpop.f32.mrf.mxu0  ;;  %v2678_v16 = vmul.f32 %v2027_v7, %v2550_v20  ;;  %v2681_v4 = vmul.f32 %v2027_v7, %v2556_v27  ;;  %v2684_v21 = vmul.f32 %v2027_v7, %v2539_v14 }
 0x1bd   : > { %v1080_v51 = vadd.f32 %v1079_v31, %v1078_v55  ;;  %v2687_v11 = vmul.f32 %v2027_v7, %v2547_v50 }
 0x1be   : > { %3024 = vst [vmem:[#allocation13_spill] sm:$0xff] %v2678_v16  ;;  %3025 = vst [vmem:[#allocation14_spill] sm:$0xff] %v2681_v4  ;;  %v2689_v19 = vpop.eup %2028  ;;  %v1087_v40 = vadd.f32 %v1086_v39, %v1085_v36  ;;  %v2691_v42 = vpop.f32.mrf.mxu0 }
 0x1bf   : > { %3026 = vst [vmem:[#allocation15_spill] sm:$0xff] %v2684_v21  ;;  %3027 = vst [vmem:[#allocation16_spill] sm:$0xff] %v2687_v11  ;;  %v2031_v48 = vpop.eup %2030  ;;  %2046 = vrcp.f32 %v1080_v51 }
 0x1c0   : > { %v2693_v46 = vpop.eup %2032  ;;  %v1088_v20 = vrot.slane %v1087_v40, 1  ;;  %v2695_v57 = vpop.f32.mrf.mxu0  ;;  %v2698_v27 = vmul.f32 %v2031_v48, %v2576_v5  ;;  %v2701_v14 = vmul.f32 %v2031_v48, %v2585_v17  ;;  %v2704_v50 = vmul.f32 %v2031_v48, %v2559_v47 }
 0x1c1   : > { %v2035_v59 = vpop.eup %2034  ;;  %v1090_v61 = vadd.f32 %v2693_v46, %v2689_v19  ;;  %v2709_v0 = vmul.f32 %v2031_v48, %v2565_v56 }
 0x1c2   : > { %3028 = vst [vmem:[#allocation17_spill] sm:$0xff] %v2698_v27  ;;  %3029 = vst [vmem:[#allocation18_spill] sm:$0xff] %v2701_v14  ;;  %v2037_v10 = vpop.eup %2036  ;;  %v1089_v9 = vadd.f32 %v1088_v20, %v1087_v40  ;;  %v2711_v24 = vpop.f32.mrf.mxu0 }
 0x1c3   : > { %3030 = vst [vmem:[#allocation19_spill] sm:$0xff] %v2704_v50  ;;  %3031 = vst [vmem:[#allocation20_spill] sm:$0xff] %v2709_v0  ;;  %v2713_v8 = vpop.eup %2038  ;;  %v1091_v5 = vadd.f32 %v2035_v59, %v1090_v61 }
 0x1c4   : > { %v2715_v55 = vpop.eup %2040  ;;  %2048 = vrcp.f32 %v1089_v9  ;;  %v2717_v17 = vpop.f32.mrf.mxu0 }
 0x1c5   : > { %v1092_v47 = vadd.f32 %v2037_v10, %v1091_v5  ;;  %v1099_v36 = vadd.f32 %v2715_v55, %v2713_v8  ;;  %v2043_v7 = vpop.eup %2042 }
 0x1c6   : > { %v2721_v31 = vpop.f32.mrf.mxu0  ;;  %v2045_v51 = vpop.eup %2044 }
 0x1c7   : > { %v1093_v56 = vrot.slane %v1092_v47, 4  ;;  %v1100_v39 = vadd.f32 %v2043_v7, %v1099_v36 }
 0x1c8   : > { %v2723_v40 = vpop.f32.mrf.mxu0 }
 0x1c9   : > { %v1094_v48 = vadd.f32 %v1093_v56, %v1092_v47  ;;  %v1101_v20 = vadd.f32 %v2045_v51, %v1100_v39 }
 0x1ca   : > { %v2725_v61 = vpop.f32.mrf.mxu0 }
 0x1cb   : > { %v1095_v1 = vrot.slane %v1094_v48, 2  ;;  %v1102_v9 = vrot.slane %v1101_v20, 4 }
 0x1cc   : > { %v2047_v38 = vpop.eup %2046  ;;  %v2727_v45 = vpop.f32.mrf.mxu0 }
 0x1cd   : > { %v1096_v5 = vadd.f32 %v1095_v1, %v1094_v48  ;;  %v1103_v30 = vadd.f32 %v1102_v9, %v1101_v20  ;;  %v2730_v26 = vmul.f32 %v2047_v38, %v2618_v15  ;;  %v2735_v36 = vmul.f32 %v2047_v38, %v2623_v32 }
 0x1ce   : > { %v2732_v54 = vpop.f32.mrf.mxu0  ;;  %v2738_v47 = vmul.f32 %v2047_v38, %v2595_v43  ;;  %v2741_v56 = vmul.f32 %v2047_v38, %v2601_v60 }
 0x1cf   : > { %v1097_v39 = vrot.slane %v1096_v5, 1  ;;  %v1104_v6 = vrot.slane %v1103_v30, 2 }
 0x1d0   : > { %3032 = vst [vmem:[#allocation21_spill] sm:$0xff] %v2738_v47  ;;  %3033 = vst [vmem:[#allocation22_spill] sm:$0xff] %v2741_v56  ;;  %v2743_v22 = vpop.f32.mrf.mxu0 }
 0x1d1   : > { %v2049_v1 = vpop.eup %2048  ;;  %v1098_v48 = vadd.f32 %v1097_v39, %v1096_v5  ;;  %v1105_v20 = vadd.f32 %v1104_v6, %v1103_v30 }
 0x1d2   : > { %v2745_v15 = vpop.f32.mrf.mxu0  ;;  %v2748_v9 = vmul.f32 %v2049_v1, %v2641_v62  ;;  %v2751_v32 = vmul.f32 %v2049_v1, %v2646_v41  ;;  %v2754_v43 = vmul.f32 %v2049_v1, %v2626_v29  ;;  %v2757_v60 = vmul.f32 %v2049_v1, %v2632_v33 }
 0x1d3   : > { %2050 = vrcp.f32 %v1098_v48  ;;  %v1106_v38 = vrot.slane %v1105_v20, 1  ;;  %v1128_v41 = vmax.f32 %v2621_v25, %v2630_v35  ;;  %v1122_v1 = vmax.f32 %v2590_v58, %v2593_v37 }
 0x1d4   : > { %v2759_v63 = vpop.f32.mrf.mxu0  ;;  %v1152_v48 = vmax.f32 %v2732_v54, %v2743_v22 }
 0x1d5   : > { %v1107_v5 = vadd.f32 %v1106_v38, %v1105_v20  ;;  %v1155_v21 = vmax.f32 %v2745_v15, %v2759_v63 }
 0x1d6   : > { %v779_v6 = vpop.f32.mrf.mxu0 }
 0x1d7   : > { %2052 = vrcp.f32 %v1107_v5 }
 0x1d8   : > { %v781_v30 = vpop.f32.mrf.mxu0 }
 0x1d9   : > { %v1158_v39 = vmax.f32 %v779_v6, %v781_v30 }
 0x1da   : > { %v783_v62 = vpop.f32.mrf.mxu0 }
 0x1db   : > { %1159 = vmax.xlane.f32.xlu0 %v1158_v39 }
 0x1dc   : > { %v785_v11 = vpop.f32.mrf.mxu0 }
 0x1dd   : > { %v1161_v29 = vmax.f32 %v783_v62, %v785_v11 }
 0x1df   : > { %1129 = vmax.xlane.f32.xlu0 %v1128_v41  ;;  %1162 = vmax.xlane.f32.xlu1 %v1161_v29  ;;  %v1116_v29 = vmax.f32 %v2562_v53, %v2574_v3 }
 0x1e0   : > { %v2051_v33 = vpop.eup %2050 }
 0x1e1   : > { %v2767_v20 = vmul.f32 %v2051_v33, %v2035_v59  ;;  %v2769_v38 = vmul.f32 %v2051_v33, %v2037_v10  ;;  %v2772_v5 = vmul.f32 %v2051_v33, %v2689_v19  ;;  %v2775_v39 = vmul.f32 %v2051_v33, %v2693_v46 }
 0x1e2   : > { %v1146_v46 = vmax.f32 %v2721_v31, %v2723_v40  ;;  %v1149_v33 = vmax.f32 %v2725_v61, %v2727_v45 }
 0x1e3   : > { %1123 = vmax.xlane.f32.xlu0 %v1122_v1  ;;  %1153 = vmax.xlane.f32.xlu1 %v1152_v48  ;;  %v1125_v1 = vmax.f32 %v2597_v49, %v2603_v2  ;;  %v1119_v48 = vmax.f32 %v2580_v13, %v2588_v23 }
 0x1e4   : > { %v2053_v41 = vpop.eup %2052 }
 0x1e5   : > { %v2781_v0 = vmul.f32 %v2053_v41, %v2043_v7  ;;  %v2783_v59 = vmul.f32 %v2053_v41, %v2045_v51  ;;  %v2786_v10 = vmul.f32 %v2053_v41, %v2713_v8  ;;  %v2789_v19 = vmul.f32 %v2053_v41, %v2715_v55  ;;  %v2809_v41 = vpop.f32.mrf.mxu0 }
 0x1e6   : > { %v1140_v7 = vmax.f32 %v2691_v42, %v2695_v57  ;;  %v1143_v8 = vmax.f32 %v2711_v24, %v2717_v17  ;;  %v1134_v55 = vmax.f32 %v2652_v12, %v2667_v28  ;;  %v1131_v51 = vmax.f32 %v2639_v44, %v2644_v18 }
 0x1e7   : > { %1117 = vmax.xlane.f32.xlu0 %v1116_v29  ;;  %1156 = vmax.xlane.f32.xlu1 %v1155_v21  ;;  %v1137_v21 = vmax.f32 %v2673_v52, %v2675_v34  ;;  %v791_v29 = vpop.f32.mrf.mxu0 }
 0x1eb   : > { %1147 = vmax.xlane.f32.xlu1 %v1146_v46  ;;  %v2811_v46 = vpop.f32.mrf.mxu0 }
 0x1ef   : > { %1150 = vmax.xlane.f32.xlu1 %v1149_v33 }
 0x1f3   : > { %1141 = vmax.xlane.f32.xlu1 %v1140_v7  ;;  %v795_v7 = vpop.f32.mrf.mxu0 }
 0x1f7   : > { %1144 = vmax.xlane.f32.xlu1 %v1143_v8  ;;  %v1389_v8 = vpack.c.bf16 %v795_v7, %v791_v29 }
 0x1f9   : > { %1452 = vmatprep.mubr.bf16.mxu1 %v1389_v8 }
 0x1fb   : > { %1135 = vmax.xlane.f32.xlu1 %v1134_v55 }
 0x1ff   : > { %1138 = vmax.xlane.f32.xlu1 %v1137_v21 }
 0x203   : > { %1132 = vmax.xlane.f32.xlu1 %v1131_v51 }
 0x207   : > { %1126 = vmax.xlane.f32.xlu1 %v1125_v1 }
 0x20b   : > { %1120 = vmax.xlane.f32.xlu1 %v1119_v48 }
 0x264   : > { %v1160_v55 = vpop.xlane.xlu0 %1159 }
 0x265   : > { %v1192_v21 = vsub.f32 %v779_v6, %v1160_v55  ;;  %v1193_v51 = vsub.f32 %v781_v30, %v1160_v55 }
 0x267   : > { %v1252_v50 = vmul.f32 1.442695, %v1192_v21  ;;  %v1254_v1 = vmul.f32 1.442695, %v1193_v51 }
 0x268   : > { %v1163_v4 = vpop.xlane.xlu1 %1162  ;;  %v1130_v21 = vpop.xlane.xlu0 %1129 }
 0x269   : > { %2054 = vpow2.f32 %v1252_v50  ;;  %v1194_v16 = vsub.f32 %v783_v62, %v1163_v4  ;;  %v1195_v48 = vsub.f32 %v785_v11, %v1163_v4 }
 0x26a   : > { %2056 = vpow2.f32 %v1254_v1 }
 0x26b   : > { %v1256_v14 = vmul.f32 1.442695, %v1194_v16  ;;  %v1258_v27 = vmul.f32 1.442695, %v1195_v48 }
 0x26c   : > { %v1154_v56 = vpop.xlane.xlu1 %1153 }
 0x26d   : > { %v1188_v47 = vsub.f32 %v2732_v54, %v1154_v56  ;;  %v1189_v33 = vsub.f32 %v2743_v22, %v1154_v56  ;;  %2058 = vpow2.f32 %v1256_v14 }
 0x26e   : > { %2060 = vpow2.f32 %v1258_v27 }
 0x26f   : > { %v1244_v29 = vmul.f32 1.442695, %v1188_v47  ;;  %v1246_v7 = vmul.f32 1.442695, %v1189_v33 }
 0x270   : > { %v1157_v6 = vpop.xlane.xlu1 %1156 }
 0x271   : > { %v1190_v30 = vsub.f32 %v2745_v15, %v1157_v6  ;;  %v1191_v8 = vsub.f32 %v2759_v63, %v1157_v6  ;;  %2062 = vpow2.f32 %v1244_v29 }
 0x272   : > { %2064 = vpow2.f32 %v1246_v7 }
 0x273   : > { %v1248_v50 = vmul.f32 1.442695, %v1190_v30  ;;  %v1250_v4 = vmul.f32 1.442695, %v1191_v8 }
 0x274   : > { %v1148_v16 = vpop.xlane.xlu1 %1147 }
 0x275   : > { %v1184_v11 = vsub.f32 %v2721_v31, %v1148_v16  ;;  %v1185_v54 = vsub.f32 %v2723_v40, %v1148_v16  ;;  %2066 = vpow2.f32 %v1248_v50 }
 0x276   : > { %v2055_v62 = vpop.eup %2054  ;;  %2068 = vpow2.f32 %v1250_v4  ;;  %v1173_v4 = vsub.f32 %v2630_v35, %v1130_v21 }
 0x277   : > { %v2057_v22 = vpop.eup %2056  ;;  %v1236_v14 = vmul.f32 1.442695, %v1184_v11  ;;  %v1238_v27 = vmul.f32 1.442695, %v1185_v54  ;;  %v1124_v54 = vpop.xlane.xlu0 %1123 }
 0x278   : > { %v1151_v47 = vpop.xlane.xlu1 %1150  ;;  %v1302_v56 = vadd.f32 %v2057_v22, %v2055_v62  ;;  %v1214_v35 = vmul.f32 1.442695, %v1173_v4 }
 0x279   : > { %2070 = vpow2.f32 %v1236_v14  ;;  %v1186_v63 = vsub.f32 %v2725_v61, %v1151_v47  ;;  %v1187_v15 = vsub.f32 %v2727_v45, %v1151_v47  ;;  %v2825_v61 = vpop.f32.mrf.mxu0  ;;  %v1172_v45 = vsub.f32 %v2621_v25, %v1130_v21 }
 0x27a   : > { %2072 = vpow2.f32 %v1238_v27  ;;  %1303 = vadd.xlane.f32.xlu0 %v1302_v56  ;;  %v2059_v31 = vpop.eup %2058 }
 0x27b   : > { %v1240_v33 = vmul.f32 1.442695, %v1186_v63  ;;  %v1242_v55 = vmul.f32 1.442695, %v1187_v15  ;;  %v2061_v51 = vpop.eup %2060  ;;  %v1418_v29 = vpack.c.bf16 %v2059_v31, %v2055_v62  ;;  %v1212_v25 = vmul.f32 1.442695, %v1172_v45 }
 0x27c   : > { %v1142_v40 = vpop.xlane.xlu1 %1141  ;;  %v1419_v7 = vpack.c.bf16 %v2061_v51, %v2057_v22  ;;  %v1305_v6 = vadd.f32 %v2061_v51, %v2059_v31  ;;  %v2831_v22 = vpop.f32.mrf.mxu0  ;;  %v1168_v51 = vsub.f32 %v2590_v58, %v1124_v54 }
 0x27d   : > { %2074 = vpow2.f32 %v1240_v33  ;;  %v1180_v1 = vsub.f32 %v2691_v42, %v1142_v40  ;;  %v1181_v48 = vsub.f32 %v2695_v57, %v1142_v40 }
 0x27e   : > { %2076 = vpow2.f32 %v1242_v55  ;;  %v2063_v50 = vpop.eup %2062  ;;  %1420 = vmatprep.subr.bf16.mxu1 %v1419_v7  ;;  %1306 = vadd.xlane.f32.xlu1 %v1305_v6  ;;  %v2835_v21 = vpop.f32.mrf.mxu0 }
 0x27f   : > { %v1228_v30 = vmul.f32 1.442695, %v1180_v1  ;;  %v1230_v8 = vmul.f32 1.442695, %v1181_v48  ;;  %v2065_v11 = vpop.eup %2064  ;;  %1421 = vmatpush1.bf16.xpose.msra.mxu1 %v1418_v29  ;;  %v1169_v29 = vsub.f32 %v2593_v37, %v1124_v54  ;;  %v1118_v7 = vpop.xlane.xlu0 %1117 }
 0x280   : > { %v1145_v16 = vpop.xlane.xlu1 %1144  ;;  %v1296_v62 = vadd.f32 %v2065_v11, %v2063_v50  ;;  %v2841_v58 = vpop.f32.mrf.mxu0  ;;  %v1164_v37 = vsub.f32 %v2562_v53, %v1118_v7 }
 0x281   : > { %2078 = vpow2.f32 %v1228_v30  ;;  %v1182_v42 = vsub.f32 %v2711_v24, %v1145_v16  ;;  %v1183_v57 = vsub.f32 %v2717_v17, %v1145_v16 }
 0x282   : > { %2080 = vpow2.f32 %v1230_v8  ;;  %v2067_v47 = vpop.eup %2066  ;;  %1297 = vadd.xlane.f32.xlu0 %v1296_v62 }
 0x283   : > { %v1232_v14 = vmul.f32 1.442695, %v1182_v42  ;;  %v1234_v27 = vmul.f32 1.442695, %v1183_v57  ;;  %v2069_v63 = vpop.eup %2068  ;;  %v1416_v33 = vpack.c.bf16 %v2067_v47, %v2063_v50  ;;  %v1204_v50 = vmul.f32 1.442695, %v1168_v51 }
 0x284   : > { %v1136_v56 = vpop.xlane.xlu1 %1135  ;;  %v1417_v55 = vpack.c.bf16 %v2069_v63, %v2065_v11  ;;  %v1299_v31 = vadd.f32 %v2069_v63, %v2067_v47  ;;  %v1206_v11 = vmul.f32 1.442695, %v1169_v29  ;;  %v1165_v42 = vsub.f32 %v2574_v3, %v1118_v7 }
 0x285   : > { %2082 = vpow2.f32 %v1232_v14  ;;  %v1176_v15 = vsub.f32 %v2652_v12, %v1136_v56  ;;  %v1177_v24 = vsub.f32 %v2667_v28, %v1136_v56  ;;  %v1196_v47 = vmul.f32 1.442695, %v1164_v37 }
 0x286   : > { %v2071_v17 = vpop.eup %2070  ;;  %2084 = vpow2.f32 %v1234_v27  ;;  %1422 = vmatprep.subr.bf16.mxu1 %v1417_v55  ;;  %1300 = vadd.xlane.f32.xlu1 %v1299_v31  ;;  %v2847_v27 = vpop.f32.mrf.mxu0  ;;  %v1198_v56 = vmul.f32 1.442695, %v1165_v42 }
 0x287   : > { %v2073_v40 = vpop.eup %2072  ;;  %2086 = vpow2.f32 %v1212_v25  ;;  %v1220_v1 = vmul.f32 1.442695, %v1176_v15  ;;  %v1222_v48 = vmul.f32 1.442695, %v1177_v24  ;;  %1423 = vmatpush1.bf16.xpose.msra.mxu1 %v1416_v33 }
 0x288   : > { %2088 = vpow2.f32 %v1214_v35  ;;  %v1139_v12 = vpop.xlane.xlu1 %1138  ;;  %v1290_v28 = vadd.f32 %v2073_v40, %v2071_v17  ;;  %v2851_v33 = vpop.f32.mrf.mxu0 }
 0x289   : > { %2090 = vpow2.f32 %v1220_v1  ;;  %v1178_v6 = vsub.f32 %v2673_v52, %v1139_v12  ;;  %v1179_v45 = vsub.f32 %v2675_v34, %v1139_v12 }
 0x28a   : > { %v2075_v30 = vpop.eup %2074  ;;  %2092 = vpow2.f32 %v1222_v48  ;;  %1291 = vadd.xlane.f32.xlu0 %v1290_v28  ;;  %v2855_v28 = vpop.f32.mrf.mxu0 }
 0x28b   : > { %v2077_v8 = vpop.eup %2076  ;;  %v1224_v4 = vmul.f32 1.442695, %v1178_v6  ;;  %v1226_v16 = vmul.f32 1.442695, %v1179_v45  ;;  %v1414_v25 = vpack.c.bf16 %v2075_v30, %v2071_v17 }
 0x28c   : > { %v1133_v57 = vpop.xlane.xlu1 %1132  ;;  %v1415_v54 = vpack.c.bf16 %v2077_v8, %v2073_v40  ;;  %v1293_v62 = vadd.f32 %v2077_v8, %v2075_v30  ;;  %v815_v37 = vpop.f32.mrf.mxu0 }
 0x28d   : > { %2094 = vpow2.f32 %v1224_v4  ;;  %v1174_v52 = vsub.f32 %v2639_v44, %v1133_v57  ;;  %v1175_v34 = vsub.f32 %v2644_v18, %v1133_v57 }
 0x28e   : > { %v2079_v14 = vpop.eup %2078  ;;  %2096 = vpow2.f32 %v1226_v16  ;;  %1424 = vmatprep.subr.bf16.mxu1 %v1415_v54  ;;  %1294 = vadd.xlane.f32.xlu1 %v1293_v62  ;;  %v819_v62 = vpop.f32.mrf.mxu0 }
 0x28f   : > { %v2081_v53 = vpop.eup %2080  ;;  %2098 = vpow2.f32 %v1204_v50  ;;  %v1216_v35 = vmul.f32 1.442695, %v1174_v52  ;;  %v1218_v3 = vmul.f32 1.442695, %v1175_v34  ;;  %1425 = vmatpush1.bf16.xpose.msra.mxu1 %v1414_v25 }
 0x290   : > { %2100 = vpow2.f32 %v1206_v11  ;;  %v1127_v63 = vpop.xlane.xlu1 %1126  ;;  %v1284_v15 = vadd.f32 %v2081_v53, %v2079_v14 }
 0x291   : > { %2102 = vpow2.f32 %v1216_v35  ;;  %v1170_v44 = vsub.f32 %v2597_v49, %v1127_v63  ;;  %v1171_v18 = vsub.f32 %v2603_v2, %v1127_v63 }
 0x292   : > { %v2083_v24 = vpop.eup %2082  ;;  %2104 = vpow2.f32 %v1218_v3  ;;  %1285 = vadd.xlane.f32.xlu0 %v1284_v15  ;;  %v821_v3 = vpop.f32.mrf.mxu0 }
 0x293   : > { %v2085_v17 = vpop.eup %2084  ;;  %2106 = vpow2.f32 %v1196_v47  ;;  %v1208_v55 = vmul.f32 1.442695, %v1170_v44  ;;  %v1210_v31 = vmul.f32 1.442695, %v1171_v18  ;;  %v1412_v7 = vpack.c.bf16 %v2083_v24, %v2079_v14 }
 0x294   : > { %v2087_v40 = vpop.eup %2086  ;;  %2108 = vpow2.f32 %v1198_v56  ;;  %v1121_v51 = vpop.xlane.xlu1 %1120  ;;  %v1413_v1 = vpack.c.bf16 %v2085_v17, %v2081_v53  ;;  %v1287_v48 = vadd.f32 %v2085_v17, %v2083_v24 }
 0x295   : > { %v2089_v29 = vpop.eup %2088  ;;  %2110 = vpow2.f32 %v1208_v55  ;;  %v1166_v49 = vsub.f32 %v2580_v13, %v1121_v51  ;;  %v1167_v2 = vsub.f32 %v2588_v23, %v1121_v51  ;;  %v823_v18 = vpop.f32.mrf.mxu0 }
 0x296   : > { %v2091_v12 = vpop.eup %2090  ;;  %2112 = vpow2.f32 %v1210_v31  ;;  %1426 = vmatprep.subr.bf16.mxu1 %v1413_v1  ;;  %1288 = vadd.xlane.f32.xlu1 %v1287_v48  ;;  %v1272_v23 = vadd.f32 %v2089_v29, %v2087_v40 }
 0x297   : > { %v2093_v6 = vpop.eup %2092  ;;  %v1200_v45 = vmul.f32 1.442695, %v1166_v49  ;;  %v1202_v30 = vmul.f32 1.442695, %v1167_v2  ;;  %1427 = vmatpush1.bf16.xpose.msra.mxu1 %v1412_v7  ;;  %v825_v51 = vpop.f32.mrf.mxu0 }
 0x298   : > { %v1278_v8 = vadd.f32 %v2093_v6, %v2091_v12 }
 0x299   : > { %2114 = vpow2.f32 %v1200_v45  ;;  %v829_v1 = vpop.f32.mrf.mxu0 }
 0x29a   : > { %v2095_v50 = vpop.eup %2094  ;;  %2116 = vpow2.f32 %v1202_v30  ;;  %1279 = vadd.xlane.f32.xlu0 %v1278_v8  ;;  %v3034_v30 = vpack.c.bf16 %v2811_v46, %v2809_v41 }
 0x29b   : > { %v2097_v13 = vpop.eup %2096  ;;  %v1410_v57 = vpack.c.bf16 %v2095_v50, %v2091_v12  ;;  %v831_v49 = vpop.f32.mrf.mxu0  ;;  %v282_v12 = vld [vmem:[%s3008_s4] sm:$0xf] }
 0x29c   : > { %v2099_v4 = vpop.eup %2098  ;;  %v1411_v16 = vpack.c.bf16 %v2097_v13, %v2093_v6  ;;  %v1281_v11 = vadd.f32 %v2097_v13, %v2095_v50  ;;  %v1391_v6 = vpack.c.bf16 %v2841_v58, %v2831_v22  ;;  %v1393_v50 = vpack.c.bf16 %v815_v37, %v2851_v33 }
 0x29d   : > { %v2101_v42 = vpop.eup %2100  ;;  %v833_v2 = vpop.f32.mrf.mxu0  ;;  %v1390_v13 = vpack.c.bf16 %v2835_v21, %v2825_v61  ;;  %v1392_v22 = vpack.c.bf16 %v2855_v28, %v2847_v27 }
 0x29e   : > { %v2103_v54 = vpop.eup %2102  ;;  %1273 = vadd.xlane.f32.xlu0 %v1272_v23  ;;  %1428 = vmatprep.subr.bf16.mxu1 %v1411_v16  ;;  %v1266_v25 = vadd.f32 %v2101_v42, %v2099_v4  ;;  %v1395_v16 = vpack.c.bf16 %v825_v51, %v821_v3  ;;  %v1396_v61 = vpack.c.bf16 %v833_v2, %v829_v1 }
 0x29f   : > { %v2105_v52 = vpop.eup %2104  ;;  %1282 = vadd.xlane.f32.xlu1 %v1281_v11  ;;  %1429 = vmatpush1.bf16.xpose.msra.mxu1 %v1410_v57  ;;  %v1408_v17 = vpack.c.bf16 %v2103_v54, %v2087_v40  ;;  %v835_v40 = vpop.f32.mrf.mxu0  ;;  %v1394_v11 = vpack.c.bf16 %v823_v18, %v819_v62 }
 0x2a0   : > { %v2107_v34 = vpop.eup %2106  ;;  %v1409_v14 = vpack.c.bf16 %v2105_v52, %v2089_v29  ;;  %v1275_v53 = vadd.f32 %v2105_v52, %v2103_v54  ;;  %v1397_v46 = vpack.c.bf16 %v835_v40, %v831_v49 }
 0x2a1   : > { %v2109_v47 = vpop.eup %2108  ;;  %v839_v45 = vpop.f32.mrf.mxu0 }
 0x2a2   : > { %v2111_v35 = vpop.eup %2110  ;;  %1267 = vadd.xlane.f32.xlu0 %v1266_v25  ;;  %1430 = vmatprep.subr.bf16.mxu1 %v1409_v14  ;;  %v1260_v63 = vadd.f32 %v2109_v47, %v2107_v34  ;;  %v3035_v14 = vmov 0  }
 0x2a3   : > { %v2113_v56 = vpop.eup %2112  ;;  %1276 = vadd.xlane.f32.xlu1 %v1275_v53  ;;  %v1406_v48 = vpack.c.bf16 %v2111_v35, %v2099_v4  ;;  %v841_v8 = vpop.f32.mrf.mxu0 }
 0x2a4   : > { %v1269_v15 = vadd.f32 %v2113_v56, %v2111_v35  ;;  %v1407_v55 = vpack.c.bf16 %v2113_v56, %v2101_v42 }
 0x2a5   : > { %v843_v4 = vpop.f32.mrf.mxu0 }
 0x2a6   : > { %v2115_v44 = vpop.eup %2114  ;;  %1261 = vadd.xlane.f32.xlu0 %v1260_v63  ;;  %v1398_v52 = vpack.c.bf16 %v843_v4, %v839_v45 }
 0x2a7   : > { %v2117_v24 = vpop.eup %2116  ;;  %1270 = vadd.xlane.f32.xlu1 %v1269_v15  ;;  %1431 = vmatpush1.bf16.xpose.msra.mxu1 %v1408_v17  ;;  %v1404_v7 = vpack.c.bf16 %v2115_v44, %v2107_v34  ;;  %v845_v23 = vpop.f32.mrf.mxu0 }
 0x2a8   : > { %v1263_v31 = vadd.f32 %v2117_v24, %v2115_v44  ;;  %1432 = vmatprep.subr.bf16.mxu1 %v1407_v55  ;;  %v1405_v29 = vpack.c.bf16 %v2117_v24, %v2109_v47  ;;  %v1399_v37 = vpack.c.bf16 %v845_v23, %v841_v8 }
 0x2a9   : > { %v849_v58 = vpop.f32.mrf.mxu0 }
 0x2ab   : > { %1264 = vadd.xlane.f32.xlu1 %v1263_v31  ;;  %v851_v41 = vpop.f32.mrf.mxu0 }
 0x2ad   : > { %v853_v42 = vpop.f32.mrf.mxu0 }
 0x2ae   : > { %v1400_v25 = vpack.c.bf16 %v853_v42, %v849_v58 }
 0x2af   : > { %1433 = vmatpush1.bf16.xpose.msra.mxu1 %v1406_v48  ;;  %v855_v33 = vpop.f32.mrf.mxu0 }
 0x2b0   : > { %1434 = vmatprep.subr.bf16.mxu1 %v1405_v29  ;;  %v1401_v54 = vpack.c.bf16 %v855_v33, %v851_v41 }
 0x2b1   : > { %v859_v21 = vpop.f32.mrf.mxu0 }
 0x2b3   : > { %v861_v57 = vpop.f32.mrf.mxu0 }
 0x2b5   : > { %v863_v34 = vpop.f32.mrf.mxu0 }
 0x2b6   : > { %v1402_v62 = vpack.c.bf16 %v863_v34, %v859_v21  ;;  %v3041_v34 = vld [vmem:[#allocation14_spill] sm:$0xff] }
 0x2b7   : > { %1435 = vmatpush1.bf16.xpose.msra.mxu1 %v1404_v7  ;;  %v865_v27 = vpop.f32.mrf.mxu0 }
 0x2b8   : > { %v1403_v28 = vpack.c.bf16 %v865_v27, %v861_v57 }
 0x2bc   : > { %1688 = vperm.xlu0 %1944, %v282_v12  }
 0x2be   : > { %1453 = vmatmul.mubr.bf16.vlgmr.msra.gmra.mxu1 %v3034_v30 }
 0x2bf   : > { %1460 = vmatprep.mubr.bf16.mxu1 %v1391_v6 }
 0x2c6   : > { %1461 = vmatmul.mubr.bf16.gmra.mxu1 %v1390_v13 }
 0x2c7   : > { %1468 = vmatprep.mubr.bf16.mxu1 %v1393_v50 }
 0x2ce   : > { %1469 = vmatmul.mubr.bf16.gmra.mxu1 %v1392_v22  ;;  %v3037_v22 = vld [vmem:[#allocation22_spill] sm:$0xff] }
 0x2cf   : > { %1476 = vmatprep.mubr.bf16.mxu1 %v1395_v16 }
 0x2d6   : > { %1477 = vmatmul.mubr.bf16.gmra.mxu1 %v1394_v11 }
 0x2d7   : > { %1484 = vmatprep.mubr.bf16.mxu1 %v1397_v46 }
 0x2de   : > { %1485 = vmatmul.mubr.bf16.gmra.mxu1 %v1396_v61 }
 0x2df   : > { %1492 = vmatprep.mubr.bf16.mxu1 %v1399_v37 }
 0x2e6   : > { %1493 = vmatmul.mubr.bf16.gmra.mxu1 %v1398_v52 }
 0x2e7   : > { %1500 = vmatprep.mubr.bf16.mxu1 %v1401_v54  ;;  %v3040_v54 = vld [vmem:[#allocation13_spill] sm:$0xff] }
 0x2ee   : > { %1501 = vmatmul.mubr.bf16.gmra.mxu1 %v1400_v25 }
 0x2ef   : > { %1508 = vmatprep.mubr.bf16.mxu1 %v1403_v28 }
 0x2f6   : > { %1509 = vmatmul.mubr.bf16.gmra.mxu1 %v1402_v62 }
 0x2f7   : > { %1589 = vmatprep.mubr.bf16.mxu1 %v3035_v14 }
 0x303   : > { %v1304_v53 = vpop.xlane.xlu0 %1303 }
 0x304   : > { %2118 = vrcp.f32 %v1304_v53 }
 0x307   : > { %v1307_v47 = vpop.xlane.xlu1 %1306 }
 0x308   : > { %2120 = vrcp.f32 %v1307_v47  ;;  %v3042_v47 = vld [vmem:[#allocation19_spill] sm:$0xff] }
 0x30b   : > { %v1298_v35 = vpop.xlane.xlu0 %1297 }
 0x30c   : > { %2122 = vrcp.f32 %v1298_v35 }
 0x30f   : > { %v1301_v3 = vpop.xlane.xlu1 %1300 }
 0x310   : > { %2124 = vrcp.f32 %v1301_v3  ;;  %v3043_v3 = vld [vmem:[#allocation20_spill] sm:$0xff] }
 0x311   : > { %v2119_v63 = vpop.eup %2118 }
 0x312   : > { %v1385_v18 = vmul.f32 %v2119_v63, %v2781_v0  ;;  %v1384_v17 = vmul.f32 %v2119_v63, %v2767_v20  ;;  %v3044_v63 = vld [vmem:[#allocation15_spill] sm:$0xff] }
 0x313   : > { %v1292_v56 = vpop.xlane.xlu0 %1291 }
 0x314   : > { %2126 = vrcp.f32 %v1292_v56 }
 0x315   : > { %v2121_v15 = vpop.eup %2120 }
 0x316   : > { %v1387_v24 = vmul.f32 %v2121_v15, %v2783_v59  ;;  %v1386_v55 = vmul.f32 %v2121_v15, %v2769_v38 }
 0x317   : > { %v1295_v44 = vpop.xlane.xlu1 %1294 }
 0x318   : > { %2128 = vrcp.f32 %v1295_v44  ;;  %v1556_v31 = vpack.c.bf16 %v1387_v24, %v1385_v18  ;;  %v1555_v51 = vpack.c.bf16 %v1386_v55, %v1384_v17  ;;  %v3045_v44 = vld [vmem:[#allocation16_spill] sm:$0xff] }
 0x319   : > { %v2123_v48 = vpop.eup %2122 }
 0x31a   : > { %1557 = vmatprep.subr.bf16.mxu1 %v1556_v31  ;;  %v1381_v2 = vmul.f32 %v2123_v48, %v2786_v10  ;;  %v1380_v59 = vmul.f32 %v2123_v48, %v2772_v5  ;;  %v3047_v48 = vld [vmem:[#allocation8_spill] sm:$0xff] }
 0x31b   : > { %v1286_v1 = vpop.xlane.xlu0 %1285  ;;  %1558 = vmatpush1.bf16.msra.mxu1 %v1555_v51  ;;  %v3046_v51 = vld [vmem:[#allocation7_spill] sm:$0xff] }
 0x31c   : > { %2130 = vrcp.f32 %v1286_v1 }
 0x31d   : > { %v2125_v29 = vpop.eup %2124 }
 0x31e   : > { %v1383_v0 = vmul.f32 %v2125_v29, %v2789_v19  ;;  %v1382_v20 = vmul.f32 %v2125_v29, %v2775_v39 }
 0x31f   : > { %v1289_v49 = vpop.xlane.xlu1 %1288 }
 0x320   : > { %2132 = vrcp.f32 %v1289_v49  ;;  %v1554_v7 = vpack.c.bf16 %v1383_v0, %v1381_v2  ;;  %v1553_v38 = vpack.c.bf16 %v1382_v20, %v1380_v59  ;;  %v3048_v49 = vld [vmem:[#allocation5_spill] sm:$0xff]  ;;  %v3049_v0 = vld [vmem:[#allocation6_spill] sm:$0xff] }
 0x321   : > { %v2127_v12 = vpop.eup %2126 }
 0x322   : > { %1559 = vmatprep.subr.bf16.mxu1 %v1554_v7  ;;  %v1377_v45 = vmul.f32 %v2127_v12, %v2748_v9  ;;  %v1376_v10 = vmul.f32 %v2127_v12, %v2730_v26 }
 0x323   : > { %v1280_v40 = vpop.xlane.xlu0 %1279  ;;  %1560 = vmatpush1.bf16.msra.mxu1 %v1553_v38 }
 0x324   : > { %2134 = vrcp.f32 %v1280_v40  ;;  %v3050_v40 = vld [vmem:[#allocation9_spill] sm:$0xff] }
 0x325   : > { %v2129_v6 = vpop.eup %2128 }
 0x326   : > { %v1379_v30 = vmul.f32 %v2129_v6, %v2751_v32  ;;  %v1378_v8 = vmul.f32 %v2129_v6, %v2735_v36  ;;  %v3036_v32 = vld [vmem:[#allocation21_spill] sm:$0xff] }
 0x327   : > { %v1274_v19 = vpop.xlane.xlu0 %1273 }
 0x328   : > { %v1283_v5 = vpop.xlane.xlu1 %1282  ;;  %v1552_v50 = vpack.c.bf16 %v1379_v30, %v1377_v45  ;;  %v1551_v39 = vpack.c.bf16 %v1378_v8, %v1376_v10  ;;  %v3051_v45 = vld [vmem:[#allocation10_spill] sm:$0xff]  ;;  %v3052_v10 = vld [vmem:[#allocation11_spill] sm:$0xff] }
 0x329   : > { %2136 = vrcp.f32 %v1283_v5  ;;  %v2131_v13 = vpop.eup %2130 }
 0x32a   : > { %1561 = vmatprep.subr.bf16.mxu1 %v1552_v50  ;;  %2138 = vrcp.f32 %v1274_v19  ;;  %v1373_v9 = vmul.f32 %v2131_v13, %v2754_v43  ;;  %v1372_v36 = vmul.f32 %v2131_v13, %v3036_v32  ;;  %v3038_v43 = vld [vmem:[#allocation17_spill] sm:$0xff]  ;;  %v3053_v19 = vld [vmem:[#allocation12_spill] sm:$0xff] }
 0x32b   : > { %v1268_v4 = vpop.xlane.xlu0 %1267  ;;  %1562 = vmatpush1.bf16.msra.mxu1 %v1551_v39 }
 0x32c   : > { %v1277_v23 = vpop.xlane.xlu1 %1276 }
 0x32d   : > { %v2133_v16 = vpop.eup %2132  ;;  %2140 = vrcp.f32 %v1277_v23 }
 0x32e   : > { %v1375_v26 = vmul.f32 %v2133_v16, %v2757_v60  ;;  %v1374_v58 = vmul.f32 %v2133_v16, %v3037_v22  ;;  %2142 = vrcp.f32 %v1268_v4  ;;  %v3039_v60 = vld [vmem:[#allocation18_spill] sm:$0xff]  ;;  %v332_v4 = vld [vmem:[%s3010_s6] sm:$0xff]  ;;  %v333_v16 = vld [vmem:[%s3010_s6 + $0x8] sm:$0xff] }
 0x32f   : > { %v1262_v41 = vpop.xlane.xlu0 %1261 }
 0x330   : > { %v1271_v46 = vpop.xlane.xlu1 %1270  ;;  %v1550_v11 = vpack.c.bf16 %v1375_v26, %v1373_v9  ;;  %v1549_v42 = vpack.c.bf16 %v1374_v58, %v1372_v36 }
 0x331   : > { %2144 = vrcp.f32 %v1271_v46  ;;  %v2135_v33 = vpop.eup %2134 }
 0x332   : > { %1563 = vmatprep.subr.bf16.mxu1 %v1550_v11  ;;  %2146 = vrcp.f32 %v1262_v41  ;;  %v1369_v21 = vmul.f32 %v2135_v33, %v3038_v43  ;;  %v1368_v52 = vmul.f32 %v2135_v33, %v3040_v54  ;;  %v334_v41 = vld [vmem:[%s3010_s6 + $0x10] sm:$0xff]  ;;  %v335_v11 = vld [vmem:[%s3010_s6 + $0x18] sm:$0xff]  ;;  %v337_v54 = vld [vmem:[%s3010_s6 + $0x28] sm:$0xff] }
 0x333   : > { %1564 = vmatpush1.bf16.msra.mxu1 %v1549_v42 }
 0x334   : > { %v1265_v37 = vpop.xlane.xlu1 %1264 }
 0x335   : > { %2148 = vrcp.f32 %v1265_v37 }
 0x336   : > { %v2137_v61 = vpop.eup %2136 }
 0x337   : > { %v1371_v57 = vmul.f32 %v2137_v61, %v3039_v60  ;;  %v1370_v27 = vmul.f32 %v2137_v61, %v3041_v34  ;;  %v2139_v28 = vpop.eup %2138  ;;  %v336_v60 = vld [vmem:[%s3010_s6 + $0x20] sm:$0xff] }
 0x338   : > { %v1365_v35 = vmul.f32 %v2139_v28, %v3042_v47  ;;  %v1364_v15 = vmul.f32 %v2139_v28, %v3044_v63 }
 0x339   : > { %v1548_v25 = vpack.c.bf16 %v1371_v57, %v1369_v21  ;;  %v1547_v62 = vpack.c.bf16 %v1370_v27, %v1368_v52 }
 0x33a   : > { %v2141_v53 = vpop.eup %2140 }
 0x33b   : > { %1565 = vmatprep.subr.bf16.mxu1 %v1548_v25  ;;  %v1367_v56 = vmul.f32 %v2141_v53, %v3043_v3  ;;  %v1366_v18 = vmul.f32 %v2141_v53, %v3045_v44  ;;  %v2143_v24 = vpop.eup %2142  ;;  %v338_v53 = vld [vmem:[%s3010_s6 + $0x30] sm:$0xff] }
 0x33c   : > { %1566 = vmatpush1.bf16.msra.mxu1 %v1547_v62  ;;  %v1361_v1 = vmul.f32 %v2143_v24, %v3046_v51  ;;  %v1360_v2 = vmul.f32 %v2143_v24, %v3048_v49  ;;  %v340_v24 = vld [vmem:[%s3010_s6 + $0x40] sm:$0xff] }
 0x33d   : > { %v1546_v17 = vpack.c.bf16 %v1367_v56, %v1365_v35  ;;  %v1545_v55 = vpack.c.bf16 %v1366_v18, %v1364_v15  ;;  %v339_v35 = vld [vmem:[%s3010_s6 + $0x38] sm:$0xff] }
 0x33e   : > { %v2145_v31 = vpop.eup %2144 }
 0x33f   : > { %1567 = vmatprep.subr.bf16.mxu1 %v1546_v17  ;;  %v1363_v29 = vmul.f32 %v2145_v31, %v3047_v48  ;;  %v1362_v59 = vmul.f32 %v2145_v31, %v3049_v0  ;;  %v2147_v20 = vpop.eup %2146 }
 0x340   : > { %1568 = vmatpush1.bf16.msra.mxu1 %v1545_v55  ;;  %v1357_v6 = vmul.f32 %v2147_v20, %v3050_v40  ;;  %v1356_v8 = vmul.f32 %v2147_v20, %v3052_v10  ;;  %v341_v55 = vld [vmem:[%s3010_s6 + $0x48] sm:$0xff] }
 0x341   : > { %v1544_v7 = vpack.c.bf16 %v1363_v29, %v1361_v1  ;;  %v1543_v38 = vpack.c.bf16 %v1362_v59, %v1360_v2  ;;  %v342_v2 = vld [vmem:[%s3010_s6 + $0x50] sm:$0xff]  ;;  %v343_v59 = vld [vmem:[%s3010_s6 + $0x58] sm:$0xff]  ;;  %v345_v10 = vld [vmem:[%s3010_s6 + $0x68] sm:$0xff] }
 0x342   : > { %v2149_v12 = vpop.eup %2148 }
 0x343   : > { %1569 = vmatprep.subr.bf16.mxu1 %v1544_v7  ;;  %v1359_v30 = vmul.f32 %v2149_v12, %v3051_v45  ;;  %v1358_v5 = vmul.f32 %v2149_v12, %v3053_v19  ;;  %v344_v45 = vld [vmem:[%s3010_s6 + $0x60] sm:$0xff] }
 0x344   : > { %1570 = vmatpush1.bf16.msra.mxu1 %v1543_v38 }
 0x345   : > { %v1542_v50 = vpack.c.bf16 %v1359_v30, %v1357_v6  ;;  %v1541_v39 = vpack.c.bf16 %v1358_v5, %v1356_v8 }
 0x347   : > { %1571 = vmatprep.subr.bf16.mxu1 %v1542_v50 }
 0x348   : > { %1572 = vmatpush1.bf16.msra.mxu1 %v1541_v39 }
 0x37e   : > { %v1454_v13 = vpop.f32.mrf.mxu1 }
 0x37f   : > { %v1517_v26 = vmul.f32 %v1454_v13, %v332_v4  ;;  %v346_v4 = vld [vmem:[%s3010_s6 + $0x70] sm:$0xff] }
 0x380   : > { %v1456_v23 = vpop.f32.mrf.mxu1 }
 0x382   : > { %v1457_v9 = vpop.f32.mrf.mxu1 }
 0x383   : > { %v1518_v32 = vmul.f32 %v1457_v9, %v333_v16  ;;  %v347_v16 = vld [vmem:[%s3010_s6 + $0x78] sm:$0xff] }
 0x384   : > { %v1459_v36 = vpop.f32.mrf.mxu1 }
 0x385   : > { %v1533_v22 = vpack.c.bf16 %v1518_v32, %v1517_v26 }
 0x386   : > { %v1462_v58 = vpop.f32.mrf.mxu1 }
 0x387   : > { %1590 = vmatmul.mubr.bf16.vlgmr.msra.gmra.mxu1 %v1533_v22  ;;  %v1519_v33 = vmul.f32 %v1462_v58, %v334_v41  ;;  %v280_v58 = vld [vmem:[%s3009_s5] sm:$0xf] }
 0x388   : > { %v1464_v46 = vpop.f32.mrf.mxu1  ;;  %1599 = vmatprep.mubr.bf16.mxu1 %v3035_v14  ;;  %v281_v41 = vmul.f32 2.0, %v280_v58 }
 0x38a   : > { %v1465_v42 = vpop.f32.mrf.mxu1  ;;  %1756 = vperm.xlu1 %1945, %v281_v41  }
 0x38b   : > { %v1520_v37 = vmul.f32 %v1465_v42, %v335_v11 }
 0x38c   : > { %v1467_v61 = vpop.f32.mrf.mxu1 }
 0x38d   : > { %v1534_v43 = vpack.c.bf16 %v1520_v37, %v1519_v33 }
 0x38e   : > { %v1470_v21 = vpop.f32.mrf.mxu1 }
 0x38f   : > { %1600 = vmatmul.mubr.bf16.gmra.mxu1 %v1534_v43  ;;  %v1521_v34 = vmul.f32 %v1470_v21, %v336_v60 }
 0x390   : > { %v1472_v57 = vpop.f32.mrf.mxu1  ;;  %1609 = vmatprep.mubr.bf16.mxu1 %v3035_v14 }
 0x392   : > { %v1473_v52 = vpop.f32.mrf.mxu1 }
 0x393   : > { %v1522_v27 = vmul.f32 %v1473_v52, %v337_v54 }
 0x394   : > { %v1475_v28 = vpop.f32.mrf.mxu1 }
 0x395   : > { %v1535_v25 = vpack.c.bf16 %v1522_v27, %v1521_v34 }
 0x396   : > { %v1478_v62 = vpop.f32.mrf.mxu1 }
 0x397   : > { %1610 = vmatmul.mubr.bf16.gmra.mxu1 %v1535_v25  ;;  %v1523_v56 = vmul.f32 %v1478_v62, %v338_v53 }
 0x398   : > { %v1480_v47 = vpop.f32.mrf.mxu1  ;;  %1619 = vmatprep.mubr.bf16.mxu1 %v3035_v14 }
 0x39a   : > { %v1481_v3 = vpop.f32.mrf.mxu1 }
 0x39b   : > { %v1524_v63 = vmul.f32 %v1481_v3, %v339_v35 }
 0x39c   : > { %v1483_v15 = vpop.f32.mrf.mxu1 }
 0x39d   : > { %v1536_v44 = vpack.c.bf16 %v1524_v63, %v1523_v56 }
 0x39e   : > { %v1486_v18 = vpop.f32.mrf.mxu1 }
 0x39f   : > { %1620 = vmatmul.mubr.bf16.gmra.mxu1 %v1536_v44  ;;  %v1525_v51 = vmul.f32 %v1486_v18, %v340_v24 }
 0x3a0   : > { %v1488_v17 = vpop.f32.mrf.mxu1  ;;  %1629 = vmatprep.mubr.bf16.mxu1 %v3035_v14 }
 0x3a2   : > { %v1489_v31 = vpop.f32.mrf.mxu1 }
 0x3a3   : > { %v1526_v1 = vmul.f32 %v1489_v31, %v341_v55 }
 0x3a4   : > { %v1491_v48 = vpop.f32.mrf.mxu1 }
 0x3a5   : > { %v1537_v29 = vpack.c.bf16 %v1526_v1, %v1525_v51 }
 0x3a6   : > { %v1494_v49 = vpop.f32.mrf.mxu1 }
 0x3a7   : > { %1630 = vmatmul.mubr.bf16.gmra.mxu1 %v1537_v29  ;;  %v1527_v7 = vmul.f32 %v1494_v49, %v342_v2 }
 0x3a8   : > { %v1496_v0 = vpop.f32.mrf.mxu1  ;;  %1639 = vmatprep.mubr.bf16.mxu1 %v3035_v14 }
 0x3aa   : > { %v1497_v20 = vpop.f32.mrf.mxu1 }
 0x3ab   : > { %v1528_v38 = vmul.f32 %v1497_v20, %v343_v59 }
 0x3ac   : > { %v1499_v12 = vpop.f32.mrf.mxu1 }
 0x3ad   : > { %v1538_v40 = vpack.c.bf16 %v1528_v38, %v1527_v7 }
 0x3ae   : > { %v1502_v6 = vpop.f32.mrf.mxu1 }
 0x3af   : > { %1640 = vmatmul.mubr.bf16.gmra.mxu1 %v1538_v40  ;;  %v1529_v19 = vmul.f32 %v1502_v6, %v344_v45 }
 0x3b0   : > { %v1504_v30 = vpop.f32.mrf.mxu1  ;;  %1649 = vmatprep.mubr.bf16.mxu1 %v3035_v14 }
 0x3b2   : > { %v1505_v8 = vpop.f32.mrf.mxu1 }
 0x3b3   : > { %v1530_v5 = vmul.f32 %v1505_v8, %v345_v10  ;;  %v331_v8 = vld [vmem:[%s3007_s3] sm:$0x3] }
 0x3b4   : > { %v1507_v50 = vpop.f32.mrf.mxu1 }
 0x3b5   : > { %v1539_v39 = vpack.c.bf16 %v1530_v5, %v1529_v19  ;;  %v1689_v19 = vpop.permute.xlu0 %1688 }
 0x3b6   : > { %v1510_v13 = vpop.f32.mrf.mxu1 }
 0x3b7   : > { %1650 = vmatmul.mubr.bf16.gmra.mxu1 %v1539_v39  ;;  %v1531_v26 = vmul.f32 %v1510_v13, %v346_v4 }
 0x3b8   : > { %v1512_v23 = vpop.f32.mrf.mxu1  ;;  %1659 = vmatprep.mubr.bf16.mxu1 %v3035_v14 }
 0x3ba   : > { %v1513_v9 = vpop.f32.mrf.mxu1 }
 0x3bb   : > { %v1532_v32 = vmul.f32 %v1513_v9, %v347_v16 }
 0x3bc   : > { %v1515_v36 = vpop.f32.mrf.mxu1 }
 0x3bd   : > { %v1540_v22 = vpack.c.bf16 %v1532_v32, %v1531_v26 }
 0x3bf   : > { %1660 = vmatmul.mubr.bf16.gmra.mxu1 %v1540_v22 }
 0x3c0   : > { %1723 = vmatprep.mubr.bf16.mxu1 %v3035_v14 }
 0x447   : > { %v2962_v46 = vpop.f32.mrf.mxu1 }
 0x449   : > { %v1593_v11 = vpop.f32.mrf.mxu1 }
 0x44b   : > { %v1595_v42 = vpop.f32.mrf.mxu1 }
 0x44c   : > { %v1670_v33 = vpack.c.bf16 %v1595_v42, %v2962_v46 }
 0x44d   : > { %v1597_v37 = vpop.f32.mrf.mxu1 }
 0x44e   : > { %v1671_v61 = vpack.c.bf16 %v1597_v37, %v1593_v11 }
 0x44f   : > { %v1601_v43 = vpop.f32.mrf.mxu1 }
 0x451   : > { %v1603_v21 = vpop.f32.mrf.mxu1 }
 0x453   : > { %v1605_v60 = vpop.f32.mrf.mxu1 }
 0x454   : > { %v1672_v57 = vpack.c.bf16 %v1605_v60, %v1601_v43 }
 0x455   : > { %v1607_v54 = vpop.f32.mrf.mxu1 }
 0x456   : > { %v1673_v14 = vpack.c.bf16 %v1607_v54, %v1603_v21 }
 0x457   : > { %v1611_v52 = vpop.f32.mrf.mxu1 }
 0x459   : > { %v1613_v34 = vpop.f32.mrf.mxu1 }
 0x45b   : > { %v1615_v27 = vpop.f32.mrf.mxu1 }
 0x45c   : > { %v1674_v10 = vpack.c.bf16 %v1615_v27, %v1611_v52 }
 0x45d   : > { %v1617_v28 = vpop.f32.mrf.mxu1 }
 0x45e   : > { %v1675_v30 = vpack.c.bf16 %v1617_v28, %v1613_v34  ;;  %v1757_v34 = vpop.permute.xlu1 %1756 }
 0x45f   : > { %v1621_v25 = vpop.f32.mrf.mxu1 }
 0x461   : > { %v1623_v62 = vpop.f32.mrf.mxu1 }
 0x463   : > { %v1625_v53 = vpop.f32.mrf.mxu1 }
 0x464   : > { %v1676_v45 = vpack.c.bf16 %v1625_v53, %v1621_v25 }
 0x465   : > { %v1627_v47 = vpop.f32.mrf.mxu1 }
 0x466   : > { %v1677_v6 = vpack.c.bf16 %v1627_v47, %v1623_v62 }
 0x467   : > { %v1631_v35 = vpop.f32.mrf.mxu1 }
 0x469   : > { %v1633_v3 = vpop.f32.mrf.mxu1 }
 0x46b   : > { %v1635_v56 = vpop.f32.mrf.mxu1 }
 0x46c   : > { %v1678_v40 = vpack.c.bf16 %v1635_v56, %v1631_v35 }
 0x46d   : > { %v1637_v63 = vpop.f32.mrf.mxu1 }
 0x46e   : > { %v1679_v12 = vpack.c.bf16 %v1637_v63, %v1633_v3 }
 0x46f   : > { %v1641_v15 = vpop.f32.mrf.mxu1 }
 0x471   : > { %v1643_v44 = vpop.f32.mrf.mxu1 }
 0x473   : > { %v1645_v18 = vpop.f32.mrf.mxu1 }
 0x474   : > { %v1680_v38 = vpack.c.bf16 %v1645_v18, %v1641_v15 }
 0x475   : > { %v1647_v24 = vpop.f32.mrf.mxu1 }
 0x476   : > { %v1681_v7 = vpack.c.bf16 %v1647_v24, %v1643_v44 }
 0x477   : > { %v1651_v17 = vpop.f32.mrf.mxu1 }
 0x479   : > { %v1653_v55 = vpop.f32.mrf.mxu1 }
 0x47b   : > { %v1655_v31 = vpop.f32.mrf.mxu1 }
 0x47c   : > { %v1682_v20 = vpack.c.bf16 %v1655_v31, %v1651_v17 }
 0x47d   : > { %v1657_v51 = vpop.f32.mrf.mxu1 }
 0x47e   : > { %v1683_v59 = vpack.c.bf16 %v1657_v51, %v1653_v55 }
 0x47f   : > { %v1661_v1 = vpop.f32.mrf.mxu1 }
 0x481   : > { %v1663_v48 = vpop.f32.mrf.mxu1 }
 0x483   : > { %v1665_v29 = vpop.f32.mrf.mxu1 }
 0x484   : > { %v1684_v0 = vpack.c.bf16 %v1665_v29, %v1661_v1 }
 0x485   : > { %v1667_v49 = vpop.f32.mrf.mxu1 }
 0x486   : > { %v1685_v2 = vpack.c.bf16 %v1667_v49, %v1663_v48 }
 0x488   : > { %1691 = vmatprep.subr.bf16.mxu1 %v1685_v2 }
 0x489   : > { %1692 = vmatpush1.bf16.msra.mxu1 %v1684_v0 }
 0x48a   : > { %1693 = vmatprep.subr.bf16.mxu1 %v1683_v59 }
 0x48d   : > { %1694 = vmatpush1.bf16.msra.mxu1 %v1682_v20 }
 0x48e   : > { %1695 = vmatprep.subr.bf16.mxu1 %v1681_v7 }
 0x491   : > { %1696 = vmatpush1.bf16.msra.mxu1 %v1680_v38 }
 0x492   : > { %1697 = vmatprep.subr.bf16.mxu1 %v1679_v12 }
 0x495   : > { %1698 = vmatpush1.bf16.msra.mxu1 %v1678_v40 }
 0x496   : > { %1699 = vmatprep.subr.bf16.mxu1 %v1677_v6 }
 0x499   : > { %1700 = vmatpush1.bf16.msra.mxu1 %v1676_v45 }
 0x49a   : > { %1701 = vmatprep.subr.bf16.mxu1 %v1675_v30 }
 0x49d   : > { %1702 = vmatpush1.bf16.msra.mxu1 %v1674_v10 }
 0x49e   : > { %1703 = vmatprep.subr.bf16.mxu1 %v1673_v14 }
 0x4a1   : > { %1704 = vmatpush1.bf16.msra.mxu1 %v1672_v57 }
 0x4a2   : > { %1705 = vmatprep.subr.bf16.mxu1 %v1671_v61 }
 0x4a5   : > { %1706 = vmatpush1.bf16.msra.mxu1 %v1670_v33 }
 0x4a8   : > { %1724 = vmatmul.mubr.bf16.vlgmr.msra.gmra.mxu1 %v331_v8 }
 0x568   : > { %v1725_v5 = vpop.f32.mrf.mxu1 }
 0x569   : > { %v1726_v50 = vadd.f32 %v1725_v5, %v1689_v19 }
 0x56a   : > { %v1727_v39 = vpop.f32.mrf.mxu1 }
 0x56b   : > { %v1732_v13 = vmul.f32 %v1726_v50, %v1726_v50  ;;  %v1728_v4 = vadd.f32 %v1727_v39, %v1689_v19 }
 0x56c   : > { %v1729_v23 = vpop.f32.mrf.mxu1 }
 0x56d   : > { %v1734_v16 = vsel %vm353_vm0, %v1732_v13, 0.0  ;;  %v1733_v9 = vmul.f32 %v1728_v4, %v1728_v4 }
 0x56e   : > { %v1735_v26 = vrot.slane %v1734_v16, 4  ;;  %v1730_v32 = vpop.f32.mrf.mxu1 }
 0x56f   : > { %v1741_v36 = vsel %vm353_vm0, %v1733_v9, 0.0 }
 0x570   : > { %v1736_v22 = vadd.f32 %v1735_v26, %v1734_v16  ;;  %v1742_v58 = vrot.slane %v1741_v36, 4 }
 0x572   : > { %v1737_v41 = vrot.slane %v1736_v22, 2  ;;  %v1743_v46 = vadd.f32 %v1742_v58, %v1741_v36 }
 0x574   : > { %v1738_v11 = vadd.f32 %v1737_v41, %v1736_v22  ;;  %v1744_v42 = vrot.slane %v1743_v46, 2 }
 0x576   : > { %v1739_v33 = vrot.slane %v1738_v11, 1  ;;  %v1745_v37 = vadd.f32 %v1744_v42, %v1743_v46 }
 0x578   : > { %v1740_v61 = vadd.f32 %v1739_v33, %v1738_v11  ;;  %v1746_v43 = vrot.slane %v1745_v37, 1 }
 0x57a   : > { %v1748_v21 = vmax.f32 %v1740_v61, 1e-24  ;;  %v1747_v60 = vadd.f32 %v1746_v43, %v1745_v37 }
 0x57c   : > { %2150 = vrsqrt.f32 %v1748_v21  ;;  %v1749_v57 = vmax.f32 %v1747_v60, 1e-24 }
 0x57e   : > { %2152 = vrsqrt.f32 %v1749_v57 }
 0x589   : > { %v2151_v54 = vpop.eup %2150 }
 0x58a   : > { %v1752_v14 = vmul.f32 %v2151_v54, %v1726_v50 }
 0x58b   : > { %v2153_v52 = vpop.eup %2152 }
 0x58c   : > { %v1753_v27 = vmul.f32 %v2153_v52, %v1728_v4  ;;  %v1759_v28 = vmul.f32 %v1757_v34, %v1752_v14 }
 0x58e   : > { %v1760_v25 = vmul.f32 %v1757_v34, %v1753_v27 }
 0x590   : > { %v1763_v62 = vcombine.low %v1759_v28, %v1760_v25 }
 0x592   : > { %1765 = vst [vmem:[%s271_s8] sm:$0xff] %v1763_v62 }
 0x593   : > { %2167 = shalt.err (!%p2164_p3)
}
 0x594   : > { %s2168_s20 = scalar_lea.hbm %s1779_s15, 128  ;;  %s2172_s23 = scalar_lea.hbm %s3011_s7, 256 }
 0x595   : > { %p2169_p4 = scmp.ne.s32.totalorder %s1779_s15, %s2168_s20  ;;  %p2173_p9 = scmp.lt.s32.totalorder %s1779_s15, %s3011_s7 }
 0x596   : > { %p2174_p10 = scmp.lt.s32.totalorder %s2172_s23, %s2168_s20 }
 0x597   : > { %p2170_p7 = pnand %p2169_p4, %p2297_p5 }
 0x598   : > { %p2175_p11 = por %p2174_p10, %p2173_p9 }
 0x599   : > { %p2171_p8 = pneg %p2170_p7 }
 0x59b   : > { %p2176_p12 = pnand %p2175_p11, %p2171_p8 }
 0x59d   : > { %2179 = shalt.err (!%p2176_p12)
}
 0x59e   : > { %1903 = dma.vmem_to_hbm [thread:$0]  (%p2297_p5), %s1782_s9, 128, %s1779_s15, %s1767_s16  }
 0x59f PF: > { %p1909_p13 = scmp.ge.s32.totalorder %s2214_s27, 2  ;;  %s1793_s13 = sand.u32 1, %s2202_s24  }
 0x5a0   : > { %s1794_s14 = scalar_lea.sflag [#allocation3], %s1793_s13 }
 0x5a1   : > { %p1906_p0 = pnand %p1909_p13, %p2301_p6 }
 0x5a3   : > { %p1907_p1 = pneg %p1906_p0 }
 0x5a5   : > { %2197 = dma.done.wait (%p1907_p1), %s1794_s14, 128  }
 0x5a6   : > { %2199 = vsyncadd (%p1907_p1), %s1794_s14, 4294967168  ;;  %p17_p2 = scmp.ge.s32.totalorder %s2284_s30, 4   ;;  %s3054_s24 = smov %s2206_s25 }
 0x5a7   : > { %s3055_s25 = smov %s2210_s26  ;;  %s3056_s26 = smov %s2295_s10 }
 0x5a8   : > { %s3057_s27 = smov %s2284_s30  ;;  %19 = sbr.rel (!%p17_p2) target bundleno = 3 (0x3), region = 83 }
 0x5ad   :  { %1799 = vsyncpa [#allocation3], 1 }
 0x5ae   :  { %1801 = vsyncpa [#allocation3 + $0x1], 1 }

</bundles_post_ra>
